<compile_context>
chip_gen: v5e
topology: v5e:2x2
jax: 0.10.0
libtpu: 0.0.40
codegen_flags: <defaults>
</compile_context>

<pallas_src>
import functools

import jax
import jax.numpy as jnp
from jax.experimental import pallas as pl
from jax.experimental.pallas import tpu as pltpu


def _attn_kernel(x_ref, wqkv_ref, wp_ref, bp_ref, o_ref,
                 qh_ref, kh_ref, vh_ref, ctx_ref,
                 *, num_heads, head_dim, block_b, seq, dim, compute_dtype):
    """One block of `block_b` batch elements per grid step.

    x_ref   : (Bblk, N, C)     input tokens
    wqkv_ref: (C, 3C)          pre-transposed fused qkv weight, q cols pre-scaled
    wp_ref  : (C, C)           pre-transposed proj weight
    bp_ref  : (1, C)           proj bias (f32)
    o_ref   : (Bblk, N, C)     output
    qh/kh/vh_ref : (H, Bblk, N, hd) VMEM scratch (head-batched q/k/v)
    ctx_ref : (Bblk*N, C)      VMEM scratch (lane-dense concat of head ctx)
    """
    bn = block_b * seq
    bh = num_heads * block_b

    # ---- Fused QKV projection: one (bn, C) @ (C, 3C) MXU matmul -----------
    x2 = x_ref[...].reshape(bn, dim).astype(compute_dtype)
    qkv = jnp.dot(x2, wqkv_ref[...],
                  preferred_element_type=jnp.float32)          # (bn, 3C) f32

    # ---- Layout plumbing: scatter per-head lane slices into scratch -------
    # Static, fully unrolled; only ref slice-stores (no transpose primitive).
    for h in range(num_heads):
        lo = h * head_dim
        qh_ref[h] = qkv[:, lo:lo + head_dim].reshape(
            block_b, seq, head_dim).astype(compute_dtype)
        kh_ref[h] = qkv[:, dim + lo:dim + lo + head_dim].reshape(
            block_b, seq, head_dim).astype(compute_dtype)
        vh_ref[h] = qkv[:, 2 * dim + lo:2 * dim + lo + head_dim].reshape(
            block_b, seq, head_dim).astype(compute_dtype)

    q = qh_ref[...].reshape(bh, seq, head_dim)                  # (H*Bblk, N, hd)
    k = kh_ref[...].reshape(bh, seq, head_dim)
    v = vh_ref[...].reshape(bh, seq, head_dim)

    # ---- Attention for ALL heads in one batched matmul chain --------------
    # (softmax scale is already folded into the q columns of Wqkv^T)
    s = jnp.einsum('bnd,bmd->bnm', q, k,
                   preferred_element_type=jnp.float32)          # (H*Bblk, N, N)
    s = s - jnp.max(s, axis=-1, keepdims=True)
    p = jnp.exp(s)
    p = p / jnp.sum(p, axis=-1, keepdims=True)                  # exact softmax
    # attn_drop (p=0.0) is identity.
    ctx = jnp.einsum('bnm,bmd->bnd', p.astype(compute_dtype), v,
                     preferred_element_type=jnp.float32)        # (H*Bblk, N, hd)

    # ---- Gather heads back into a lane-dense (bn, C) buffer ---------------
    ctx4 = ctx.reshape(num_heads, block_b, seq, head_dim)
    for h in range(num_heads):
        ctx_ref[:, h * head_dim:(h + 1) * head_dim] = (
            ctx4[h].reshape(bn, head_dim).astype(compute_dtype))

    # ---- Single full-width projection: (bn, C) @ (C, C) + bias ------------
    y = jnp.dot(ctx_ref[...], wp_ref[...],
                preferred_element_type=jnp.float32) + bp_ref[...]
    # proj_drop (p=0.0) is identity.
    o_ref[...] = y.reshape(block_b, seq, dim).astype(o_ref.dtype)


def _choose_block_b(B, N, C, num_heads, x_bytes, mm_bytes,
                    budget_bytes=20 * 1024 * 1024):
    """Batch elements per grid step, sized from a VMEM byte budget.

    Counts double-buffered x/out blocks, the f32 qkv / score / ctx
    intermediates, the (lane-padded) head-batched q/k/v scratches and the
    single-buffered weights.  Caps block_b at B//2 whenever B >= 2 so the
    grid has >= 2 "parallel" steps (v7x megacore); budget leaves headroom
    within v7x's 32 MiB scoped VMEM.
    """
    hd = C // num_heads
    hd_pad = max(hd, 128)            # scratch lane padding
    n_pad = -(-N // 8) * 8           # scratch sublane padding
    w_bytes = (3 * C * C + C * C + C) * mm_bytes

    def fits(bb):
        bn = bb * N
        bh = bb * num_heads
        io = 2 * 2 * bb * N * C * x_bytes                     # x + out, 2x buffered
        qkv = bn * 3 * C * 4                                  # f32 qkv matmul output
        scr = 3 * num_heads * bb * n_pad * hd_pad * mm_bytes  # q/k/v scratch
        scr += bn * C * mm_bytes                              # ctx scratch
        att = 2 * bh * N * N * 4                              # scores + exp (f32)
        out = 2 * bn * C * 4                                  # projection result etc.
        return io + qkv + scr + att + out + w_bytes <= budget_bytes

    cap = B if B == 1 else max(1, B // 2)                     # keep grid >= 2
    best = 1
    for bb in range(1, cap + 1):
        if B % bb == 0 and bb * N <= 4096 and fits(bb):
            best = bb
    return best


def attention_forward(x, w_qkv, w_proj, b_proj, num_heads,
                      block_b=None, compute_dtype=None):
    """x: (B, N, C); w_qkv: (3C, C); w_proj: (C, C); b_proj: (C,)."""
    B, N, C = x.shape
    H = num_heads
    hd = C // H
    if H * hd != C:
        raise ValueError("num_heads must divide C")
    scale = hd ** (-0.5)

    if compute_dtype is None:
        # bf16 matmul operands only pay off at real ViT widths; the small
        # demo shape stays in f32 for exact parity with the reference.
        compute_dtype = jnp.bfloat16 if C >= 256 else x.dtype

    if block_b is None:
        block_b = _choose_block_b(B, N, C, H,
                                  jnp.dtype(x.dtype).itemsize,
                                  jnp.dtype(compute_dtype).itemsize)
    if B % block_b != 0:
        raise ValueError(f"block_b={block_b} must divide batch size B={B}")
    grid_b = B // block_b

    # Wrapper-side layout plumbing (plain JAX glue):
    #  * fused, pre-transposed QKV weight (C, 3C); softmax scale folded into
    #    the q columns so the kernel never scales the (H*Bblk, N, N) scores.
    #  * pre-transposed projection weight (C, C) and (1, C) f32 bias.
    col_scale = jnp.concatenate([jnp.full((C,), scale, jnp.float32),
                                 jnp.ones((2 * C,), jnp.float32)])
    w_qkv_t = (jnp.transpose(w_qkv).astype(jnp.float32)
               * col_scale[None, :]).astype(compute_dtype)      # (C, 3C)
    w_proj_t = jnp.transpose(w_proj).astype(compute_dtype)      # (C, C)
    bp = b_proj.reshape(1, C).astype(jnp.float32)

    kernel = functools.partial(
        _attn_kernel, num_heads=H, head_dim=hd, block_b=block_b,
        seq=N, dim=C, compute_dtype=compute_dtype)

    const = dict(pipeline_mode=pl.Buffered(1))   # grid-invariant: single buffer

    return pl.pallas_call(
        kernel,
        out_shape=jax.ShapeDtypeStruct((B, N, C), x.dtype),
        grid_spec=pltpu.PrefetchScalarGridSpec(
            num_scalar_prefetch=0,
            grid=(grid_b,),
            in_specs=[
                pl.BlockSpec((block_b, N, C), lambda b: (b, 0, 0)),      # x
                pl.BlockSpec((C, 3 * C), lambda b: (0, 0), **const),     # Wqkv^T (q-scaled)
                pl.BlockSpec((C, C), lambda b: (0, 0), **const),         # Wproj^T
                pl.BlockSpec((1, C), lambda b: (0, 0), **const),         # proj bias
            ],
            out_specs=pl.BlockSpec((block_b, N, C), lambda b: (b, 0, 0)),
            scratch_shapes=[
                pltpu.VMEM((H, block_b, N, hd), compute_dtype),   # q (head-batched)
                pltpu.VMEM((H, block_b, N, hd), compute_dtype),   # k
                pltpu.VMEM((H, block_b, N, hd), compute_dtype),   # v
                pltpu.VMEM((block_b * N, C), compute_dtype),      # lane-dense ctx
            ],
        ),
        compiler_params=pltpu.CompilerParams(
            dimension_semantics=("parallel",),
            vmem_limit_bytes=32 * 1024 * 1024,
        ),
    )(x, w_qkv_t, w_proj_t, bp)


def attention_reference(x, w_qkv, w_proj, b_proj, num_heads):
    """Pure-JAX reference mirroring the PyTorch forward exactly."""
    B, N, C = x.shape
    hd = C // num_heads
    scale = hd ** (-0.5)
    qkv = jnp.einsum('bnc,dc->bnd', x, w_qkv)                        # (B, N, 3C)
    qkv = qkv.reshape(B, N, 3, num_heads, hd).transpose(2, 0, 3, 1, 4)
    q, k, v = qkv[0], qkv[1], qkv[2]                                 # (B, H, N, hd)
    attn = jnp.einsum('bhnd,bhmd->bhnm', q, k) * scale
    attn = jax.nn.softmax(attn, axis=-1)
    out = jnp.einsum('bhnm,bhmd->bhnd', attn, v)
    out = out.transpose(0, 2, 1, 3).reshape(B, N, C)
    return jnp.einsum('bnc,dc->bnd', out, w_proj) + b_proj


if __name__ == "__main__":
    # Small shapes consistent with the module: B=2 batches, N=8 tokens,
    # C=32 channels, 8 heads -> head_dim=4.
    B, N, C = 2, 8, 32
    num_heads = 8

    key = jax.random.PRNGKey(0)
    kx, kqkv, kp, kb = jax.random.split(key, 4)

    x = jax.random.normal(kx, (B, N, C), dtype=jnp.float32)
    # nn.Linear weight layout: (out_features, in_features); qkv_bias=False.
    w_qkv = 0.05 * jax.random.normal(kqkv, (3 * C, C), dtype=jnp.float32)
    w_proj = 0.05 * jax.random.normal(kp, (C, C), dtype=jnp.float32)
    b_proj = 0.05 * jax.random.normal(kb, (C,), dtype=jnp.float32)

    out = attention_forward(x, w_qkv, w_proj, b_proj, num_heads)
    out = jax.block_until_ready(out)

    ref = attention_reference(x, w_qkv, w_proj, b_proj, num_heads)
    assert out.shape == (B, N, C)
    # Exact softmax normalization + f32 accumulation -> tight tolerance.
    assert jnp.allclose(out, ref, atol=1e-4, rtol=1e-4), "mismatch vs reference"

    print("KERNEL_OK")
</pallas_src>

<mosaic_0001>
module attributes {stable_mosaic.version = 11 : i64} {
  func.func @_attn_kernel(%arg0: i32, %arg1: memref<1x8x32xf32, #tpu.memory_space<vmem>>, %arg2: memref<32x96xf32, #tpu.memory_space<vmem>>, %arg3: memref<32x32xf32, #tpu.memory_space<vmem>>, %arg4: memref<1x32xf32, #tpu.memory_space<vmem>>, %arg5: memref<1x8x32xf32, #tpu.memory_space<vmem>>, %arg6: memref<8x1x8x4xf32, #tpu.memory_space<vmem>>, %arg7: memref<8x1x8x4xf32, #tpu.memory_space<vmem>>, %arg8: memref<8x1x8x4xf32, #tpu.memory_space<vmem>>, %arg9: memref<8x32xf32, #tpu.memory_space<vmem>>) attributes {dimension_semantics = [#tpu.dimension_semantics<parallel>], iteration_bounds = array<i64: 2>, scalar_prefetch = 0 : i64, scratch_operands = 4 : i64, tpu.core_type = #tpu.core_type<tc>, window_params = [{transform_indices = @transform_0, window_bounds = array<i64: 1, 8, 32>}, {pipeline_mode = #tpu.pipeline_mode<synchronous>, transform_indices = @transform_1, window_bounds = array<i64: 32, 96>}, {pipeline_mode = #tpu.pipeline_mode<synchronous>, transform_indices = @transform_2, window_bounds = array<i64: 32, 32>}, {pipeline_mode = #tpu.pipeline_mode<synchronous>, transform_indices = @transform_3, window_bounds = array<i64: 1, 32>}, {transform_indices = @transform_4, window_bounds = array<i64: 1, 8, 32>}]} {
    %c0 = arith.constant 0 : index
    %c0_0 = arith.constant 0 : index
    %c0_1 = arith.constant 0 : index
    %0 = vector.load %arg1[%c0, %c0_0, %c0_1] : memref<1x8x32xf32, #tpu.memory_space<vmem>>, vector<1x8x32xf32>
    %1 = vector.shape_cast %0 : vector<1x8x32xf32> to vector<8x32xf32>
    %c0_2 = arith.constant 0 : index
    %c0_3 = arith.constant 0 : index
    %2 = vector.load %arg2[%c0_2, %c0_3] : memref<32x96xf32, #tpu.memory_space<vmem>>, vector<32x96xf32>
    %cst = arith.constant dense<0.000000e+00> : vector<8x96xf32>
    %3 = tpu.matmul %1, %2, %cst {dimension_numbers = #tpu.dot_dimension_numbers<[1], [0], [0], [1], [0, 0, 1, 1], [], []>} : vector<8x32xf32>, vector<32x96xf32>, vector<8x96xf32> -> vector<8x96xf32>
    %4 = vector.extract_strided_slice %3 {offsets = [0, 0], sizes = [8, 4], strides = [1, 1]} : vector<8x96xf32> to vector<8x4xf32>
    %5 = vector.shape_cast %4 : vector<8x4xf32> to vector<1x8x4xf32>
    %c0_4 = arith.constant 0 : index
    %c0_5 = arith.constant 0 : index
    %c0_6 = arith.constant 0 : index
    %c0_7 = arith.constant 0 : index
    %6 = vector.load %arg6[%c0_4, %c0_5, %c0_6, %c0_7] : memref<8x1x8x4xf32, #tpu.memory_space<vmem>>, vector<1x1x8x4xf32>
    %7 = vector.shape_cast %6 : vector<1x1x8x4xf32> to vector<1x8x4xf32>
    %8 = vector.shape_cast %5 : vector<1x8x4xf32> to vector<1x1x8x4xf32>
    tpu.vector_store %arg6[%c0_4, %c0_5, %c0_6, %c0_7], %8 {strides = array<i32>} : memref<8x1x8x4xf32, #tpu.memory_space<vmem>>, vector<1x1x8x4xf32>,
    %9 = vector.extract_strided_slice %3 {offsets = [0, 32], sizes = [8, 4], strides = [1, 1]} : vector<8x96xf32> to vector<8x4xf32>
    %10 = vector.shape_cast %9 : vector<8x4xf32> to vector<1x8x4xf32>
    %c0_8 = arith.constant 0 : index
    %c0_9 = arith.constant 0 : index
    %c0_10 = arith.constant 0 : index
    %c0_11 = arith.constant 0 : index
    %11 = vector.load %arg7[%c0_8, %c0_9, %c0_10, %c0_11] : memref<8x1x8x4xf32, #tpu.memory_space<vmem>>, vector<1x1x8x4xf32>
    %12 = vector.shape_cast %11 : vector<1x1x8x4xf32> to vector<1x8x4xf32>
    %13 = vector.shape_cast %10 : vector<1x8x4xf32> to vector<1x1x8x4xf32>
    tpu.vector_store %arg7[%c0_8, %c0_9, %c0_10, %c0_11], %13 {strides = array<i32>} : memref<8x1x8x4xf32, #tpu.memory_space<vmem>>, vector<1x1x8x4xf32>,
    %14 = vector.extract_strided_slice %3 {offsets = [0, 64], sizes = [8, 4], strides = [1, 1]} : vector<8x96xf32> to vector<8x4xf32>
    %15 = vector.shape_cast %14 : vector<8x4xf32> to vector<1x8x4xf32>
    %c0_12 = arith.constant 0 : index
    %c0_13 = arith.constant 0 : index
    %c0_14 = arith.constant 0 : index
    %c0_15 = arith.constant 0 : index
    %16 = vector.load %arg8[%c0_12, %c0_13, %c0_14, %c0_15] : memref<8x1x8x4xf32, #tpu.memory_space<vmem>>, vector<1x1x8x4xf32>
    %17 = vector.shape_cast %16 : vector<1x1x8x4xf32> to vector<1x8x4xf32>
    %18 = vector.shape_cast %15 : vector<1x8x4xf32> to vector<1x1x8x4xf32>
    tpu.vector_store %arg8[%c0_12, %c0_13, %c0_14, %c0_15], %18 {strides = array<i32>} : memref<8x1x8x4xf32, #tpu.memory_space<vmem>>, vector<1x1x8x4xf32>,
    %19 = vector.extract_strided_slice %3 {offsets = [0, 4], sizes = [8, 4], strides = [1, 1]} : vector<8x96xf32> to vector<8x4xf32>
    %20 = vector.shape_cast %19 : vector<8x4xf32> to vector<1x8x4xf32>
    %c1 = arith.constant 1 : index
    %c0_16 = arith.constant 0 : index
    %c0_17 = arith.constant 0 : index
    %c0_18 = arith.constant 0 : index
    %21 = vector.load %arg6[%c1, %c0_16, %c0_17, %c0_18] : memref<8x1x8x4xf32, #tpu.memory_space<vmem>>, vector<1x1x8x4xf32>
    %22 = vector.shape_cast %21 : vector<1x1x8x4xf32> to vector<1x8x4xf32>
    %23 = vector.shape_cast %20 : vector<1x8x4xf32> to vector<1x1x8x4xf32>
    tpu.vector_store %arg6[%c1, %c0_16, %c0_17, %c0_18], %23 {strides = array<i32>} : memref<8x1x8x4xf32, #tpu.memory_space<vmem>>, vector<1x1x8x4xf32>,
    %24 = vector.extract_strided_slice %3 {offsets = [0, 36], sizes = [8, 4], strides = [1, 1]} : vector<8x96xf32> to vector<8x4xf32>
    %25 = vector.shape_cast %24 : vector<8x4xf32> to vector<1x8x4xf32>
    %c1_19 = arith.constant 1 : index
    %c0_20 = arith.constant 0 : index
    %c0_21 = arith.constant 0 : index
    %c0_22 = arith.constant 0 : index
    %26 = vector.load %arg7[%c1_19, %c0_20, %c0_21, %c0_22] : memref<8x1x8x4xf32, #tpu.memory_space<vmem>>, vector<1x1x8x4xf32>
    %27 = vector.shape_cast %26 : vector<1x1x8x4xf32> to vector<1x8x4xf32>
    %28 = vector.shape_cast %25 : vector<1x8x4xf32> to vector<1x1x8x4xf32>
    tpu.vector_store %arg7[%c1_19, %c0_20, %c0_21, %c0_22], %28 {strides = array<i32>} : memref<8x1x8x4xf32, #tpu.memory_space<vmem>>, vector<1x1x8x4xf32>,
    %29 = vector.extract_strided_slice %3 {offsets = [0, 68], sizes = [8, 4], strides = [1, 1]} : vector<8x96xf32> to vector<8x4xf32>
    %30 = vector.shape_cast %29 : vector<8x4xf32> to vector<1x8x4xf32>
    %c1_23 = arith.constant 1 : index
    %c0_24 = arith.constant 0 : index
    %c0_25 = arith.constant 0 : index
    %c0_26 = arith.constant 0 : index
    %31 = vector.load %arg8[%c1_23, %c0_24, %c0_25, %c0_26] : memref<8x1x8x4xf32, #tpu.memory_space<vmem>>, vector<1x1x8x4xf32>
    %32 = vector.shape_cast %31 : vector<1x1x8x4xf32> to vector<1x8x4xf32>
    %33 = vector.shape_cast %30 : vector<1x8x4xf32> to vector<1x1x8x4xf32>
    tpu.vector_store %arg8[%c1_23, %c0_24, %c0_25, %c0_26], %33 {strides = array<i32>} : memref<8x1x8x4xf32, #tpu.memory_space<vmem>>, vector<1x1x8x4xf32>,
    %34 = vector.extract_strided_slice %3 {offsets = [0, 8], sizes = [8, 4], strides = [1, 1]} : vector<8x96xf32> to vector<8x4xf32>
    %35 = vector.shape_cast %34 : vector<8x4xf32> to vector<1x8x4xf32>
    %c2 = arith.constant 2 : index
    %c0_27 = arith.constant 0 : index
    %c0_28 = arith.constant 0 : index
    %c0_29 = arith.constant 0 : index
    %36 = vector.load %arg6[%c2, %c0_27, %c0_28, %c0_29] : memref<8x1x8x4xf32, #tpu.memory_space<vmem>>, vector<1x1x8x4xf32>
    %37 = vector.shape_cast %36 : vector<1x1x8x4xf32> to vector<1x8x4xf32>
    %38 = vector.shape_cast %35 : vector<1x8x4xf32> to vector<1x1x8x4xf32>
    tpu.vector_store %arg6[%c2, %c0_27, %c0_28, %c0_29], %38 {strides = array<i32>} : memref<8x1x8x4xf32, #tpu.memory_space<vmem>>, vector<1x1x8x4xf32>,
    %39 = vector.extract_strided_slice %3 {offsets = [0, 40], sizes = [8, 4], strides = [1, 1]} : vector<8x96xf32> to vector<8x4xf32>
    %40 = vector.shape_cast %39 : vector<8x4xf32> to vector<1x8x4xf32>
    %c2_30 = arith.constant 2 : index
    %c0_31 = arith.constant 0 : index
    %c0_32 = arith.constant 0 : index
    %c0_33 = arith.constant 0 : index
    %41 = vector.load %arg7[%c2_30, %c0_31, %c0_32, %c0_33] : memref<8x1x8x4xf32, #tpu.memory_space<vmem>>, vector<1x1x8x4xf32>
    %42 = vector.shape_cast %41 : vector<1x1x8x4xf32> to vector<1x8x4xf32>
    %43 = vector.shape_cast %40 : vector<1x8x4xf32> to vector<1x1x8x4xf32>
    tpu.vector_store %arg7[%c2_30, %c0_31, %c0_32, %c0_33], %43 {strides = array<i32>} : memref<8x1x8x4xf32, #tpu.memory_space<vmem>>, vector<1x1x8x4xf32>,
    %44 = vector.extract_strided_slice %3 {offsets = [0, 72], sizes = [8, 4], strides = [1, 1]} : vector<8x96xf32> to vector<8x4xf32>
    %45 = vector.shape_cast %44 : vector<8x4xf32> to vector<1x8x4xf32>
    %c2_34 = arith.constant 2 : index
    %c0_35 = arith.constant 0 : index
    %c0_36 = arith.constant 0 : index
    %c0_37 = arith.constant 0 : index
    %46 = vector.load %arg8[%c2_34, %c0_35, %c0_36, %c0_37] : memref<8x1x8x4xf32, #tpu.memory_space<vmem>>, vector<1x1x8x4xf32>
    %47 = vector.shape_cast %46 : vector<1x1x8x4xf32> to vector<1x8x4xf32>
    %48 = vector.shape_cast %45 : vector<1x8x4xf32> to vector<1x1x8x4xf32>
    tpu.vector_store %arg8[%c2_34, %c0_35, %c0_36, %c0_37], %48 {strides = array<i32>} : memref<8x1x8x4xf32, #tpu.memory_space<vmem>>, vector<1x1x8x4xf32>,
    %49 = vector.extract_strided_slice %3 {offsets = [0, 12], sizes = [8, 4], strides = [1, 1]} : vector<8x96xf32> to vector<8x4xf32>
    %50 = vector.shape_cast %49 : vector<8x4xf32> to vector<1x8x4xf32>
    %c3 = arith.constant 3 : index
    %c0_38 = arith.constant 0 : index
    %c0_39 = arith.constant 0 : index
    %c0_40 = arith.constant 0 : index
    %51 = vector.load %arg6[%c3, %c0_38, %c0_39, %c0_40] : memref<8x1x8x4xf32, #tpu.memory_space<vmem>>, vector<1x1x8x4xf32>
    %52 = vector.shape_cast %51 : vector<1x1x8x4xf32> to vector<1x8x4xf32>
    %53 = vector.shape_cast %50 : vector<1x8x4xf32> to vector<1x1x8x4xf32>
    tpu.vector_store %arg6[%c3, %c0_38, %c0_39, %c0_40], %53 {strides = array<i32>} : memref<8x1x8x4xf32, #tpu.memory_space<vmem>>, vector<1x1x8x4xf32>,
    %54 = vector.extract_strided_slice %3 {offsets = [0, 44], sizes = [8, 4], strides = [1, 1]} : vector<8x96xf32> to vector<8x4xf32>
    %55 = vector.shape_cast %54 : vector<8x4xf32> to vector<1x8x4xf32>
    %c3_41 = arith.constant 3 : index
    %c0_42 = arith.constant 0 : index
    %c0_43 = arith.constant 0 : index
    %c0_44 = arith.constant 0 : index
    %56 = vector.load %arg7[%c3_41, %c0_42, %c0_43, %c0_44] : memref<8x1x8x4xf32, #tpu.memory_space<vmem>>, vector<1x1x8x4xf32>
    %57 = vector.shape_cast %56 : vector<1x1x8x4xf32> to vector<1x8x4xf32>
    %58 = vector.shape_cast %55 : vector<1x8x4xf32> to vector<1x1x8x4xf32>
    tpu.vector_store %arg7[%c3_41, %c0_42, %c0_43, %c0_44], %58 {strides = array<i32>} : memref<8x1x8x4xf32, #tpu.memory_space<vmem>>, vector<1x1x8x4xf32>,
    %59 = vector.extract_strided_slice %3 {offsets = [0, 76], sizes = [8, 4], strides = [1, 1]} : vector<8x96xf32> to vector<8x4xf32>
    %60 = vector.shape_cast %59 : vector<8x4xf32> to vector<1x8x4xf32>
    %c3_45 = arith.constant 3 : index
    %c0_46 = arith.constant 0 : index
    %c0_47 = arith.constant 0 : index
    %c0_48 = arith.constant 0 : index
    %61 = vector.load %arg8[%c3_45, %c0_46, %c0_47, %c0_48] : memref<8x1x8x4xf32, #tpu.memory_space<vmem>>, vector<1x1x8x4xf32>
    %62 = vector.shape_cast %61 : vector<1x1x8x4xf32> to vector<1x8x4xf32>
    %63 = vector.shape_cast %60 : vector<1x8x4xf32> to vector<1x1x8x4xf32>
    tpu.vector_store %arg8[%c3_45, %c0_46, %c0_47, %c0_48], %63 {strides = array<i32>} : memref<8x1x8x4xf32, #tpu.memory_space<vmem>>, vector<1x1x8x4xf32>,
    %64 = vector.extract_strided_slice %3 {offsets = [0, 16], sizes = [8, 4], strides = [1, 1]} : vector<8x96xf32> to vector<8x4xf32>
    %65 = vector.shape_cast %64 : vector<8x4xf32> to vector<1x8x4xf32>
    %c4 = arith.constant 4 : index
    %c0_49 = arith.constant 0 : index
    %c0_50 = arith.constant 0 : index
    %c0_51 = arith.constant 0 : index
    %66 = vector.load %arg6[%c4, %c0_49, %c0_50, %c0_51] : memref<8x1x8x4xf32, #tpu.memory_space<vmem>>, vector<1x1x8x4xf32>
    %67 = vector.shape_cast %66 : vector<1x1x8x4xf32> to vector<1x8x4xf32>
    %68 = vector.shape_cast %65 : vector<1x8x4xf32> to vector<1x1x8x4xf32>
    tpu.vector_store %arg6[%c4, %c0_49, %c0_50, %c0_51], %68 {strides = array<i32>} : memref<8x1x8x4xf32, #tpu.memory_space<vmem>>, vector<1x1x8x4xf32>,
    %69 = vector.extract_strided_slice %3 {offsets = [0, 48], sizes = [8, 4], strides = [1, 1]} : vector<8x96xf32> to vector<8x4xf32>
    %70 = vector.shape_cast %69 : vector<8x4xf32> to vector<1x8x4xf32>
    %c4_52 = arith.constant 4 : index
    %c0_53 = arith.constant 0 : index
    %c0_54 = arith.constant 0 : index
    %c0_55 = arith.constant 0 : index
    %71 = vector.load %arg7[%c4_52, %c0_53, %c0_54, %c0_55] : memref<8x1x8x4xf32, #tpu.memory_space<vmem>>, vector<1x1x8x4xf32>
    %72 = vector.shape_cast %71 : vector<1x1x8x4xf32> to vector<1x8x4xf32>
    %73 = vector.shape_cast %70 : vector<1x8x4xf32> to vector<1x1x8x4xf32>
    tpu.vector_store %arg7[%c4_52, %c0_53, %c0_54, %c0_55], %73 {strides = array<i32>} : memref<8x1x8x4xf32, #tpu.memory_space<vmem>>, vector<1x1x8x4xf32>,
    %74 = vector.extract_strided_slice %3 {offsets = [0, 80], sizes = [8, 4], strides = [1, 1]} : vector<8x96xf32> to vector<8x4xf32>
    %75 = vector.shape_cast %74 : vector<8x4xf32> to vector<1x8x4xf32>
    %c4_56 = arith.constant 4 : index
    %c0_57 = arith.constant 0 : index
    %c0_58 = arith.constant 0 : index
    %c0_59 = arith.constant 0 : index
    %76 = vector.load %arg8[%c4_56, %c0_57, %c0_58, %c0_59] : memref<8x1x8x4xf32, #tpu.memory_space<vmem>>, vector<1x1x8x4xf32>
    %77 = vector.shape_cast %76 : vector<1x1x8x4xf32> to vector<1x8x4xf32>
    %78 = vector.shape_cast %75 : vector<1x8x4xf32> to vector<1x1x8x4xf32>
    tpu.vector_store %arg8[%c4_56, %c0_57, %c0_58, %c0_59], %78 {strides = array<i32>} : memref<8x1x8x4xf32, #tpu.memory_space<vmem>>, vector<1x1x8x4xf32>,
    %79 = vector.extract_strided_slice %3 {offsets = [0, 20], sizes = [8, 4], strides = [1, 1]} : vector<8x96xf32> to vector<8x4xf32>
    %80 = vector.shape_cast %79 : vector<8x4xf32> to vector<1x8x4xf32>
    %c5 = arith.constant 5 : index
    %c0_60 = arith.constant 0 : index
    %c0_61 = arith.constant 0 : index
    %c0_62 = arith.constant 0 : index
    %81 = vector.load %arg6[%c5, %c0_60, %c0_61, %c0_62] : memref<8x1x8x4xf32, #tpu.memory_space<vmem>>, vector<1x1x8x4xf32>
    %82 = vector.shape_cast %81 : vector<1x1x8x4xf32> to vector<1x8x4xf32>
    %83 = vector.shape_cast %80 : vector<1x8x4xf32> to vector<1x1x8x4xf32>
    tpu.vector_store %arg6[%c5, %c0_60, %c0_61, %c0_62], %83 {strides = array<i32>} : memref<8x1x8x4xf32, #tpu.memory_space<vmem>>, vector<1x1x8x4xf32>,
    %84 = vector.extract_strided_slice %3 {offsets = [0, 52], sizes = [8, 4], strides = [1, 1]} : vector<8x96xf32> to vector<8x4xf32>
    %85 = vector.shape_cast %84 : vector<8x4xf32> to vector<1x8x4xf32>
    %c5_63 = arith.constant 5 : index
    %c0_64 = arith.constant 0 : index
    %c0_65 = arith.constant 0 : index
    %c0_66 = arith.constant 0 : index
    %86 = vector.load %arg7[%c5_63, %c0_64, %c0_65, %c0_66] : memref<8x1x8x4xf32, #tpu.memory_space<vmem>>, vector<1x1x8x4xf32>
    %87 = vector.shape_cast %86 : vector<1x1x8x4xf32> to vector<1x8x4xf32>
    %88 = vector.shape_cast %85 : vector<1x8x4xf32> to vector<1x1x8x4xf32>
    tpu.vector_store %arg7[%c5_63, %c0_64, %c0_65, %c0_66], %88 {strides = array<i32>} : memref<8x1x8x4xf32, #tpu.memory_space<vmem>>, vector<1x1x8x4xf32>,
    %89 = vector.extract_strided_slice %3 {offsets = [0, 84], sizes = [8, 4], strides = [1, 1]} : vector<8x96xf32> to vector<8x4xf32>
    %90 = vector.shape_cast %89 : vector<8x4xf32> to vector<1x8x4xf32>
    %c5_67 = arith.constant 5 : index
    %c0_68 = arith.constant 0 : index
    %c0_69 = arith.constant 0 : index
    %c0_70 = arith.constant 0 : index
    %91 = vector.load %arg8[%c5_67, %c0_68, %c0_69, %c0_70] : memref<8x1x8x4xf32, #tpu.memory_space<vmem>>, vector<1x1x8x4xf32>
    %92 = vector.shape_cast %91 : vector<1x1x8x4xf32> to vector<1x8x4xf32>
    %93 = vector.shape_cast %90 : vector<1x8x4xf32> to vector<1x1x8x4xf32>
    tpu.vector_store %arg8[%c5_67, %c0_68, %c0_69, %c0_70], %93 {strides = array<i32>} : memref<8x1x8x4xf32, #tpu.memory_space<vmem>>, vector<1x1x8x4xf32>,
    %94 = vector.extract_strided_slice %3 {offsets = [0, 24], sizes = [8, 4], strides = [1, 1]} : vector<8x96xf32> to vector<8x4xf32>
    %95 = vector.shape_cast %94 : vector<8x4xf32> to vector<1x8x4xf32>
    %c6 = arith.constant 6 : index
    %c0_71 = arith.constant 0 : index
    %c0_72 = arith.constant 0 : index
    %c0_73 = arith.constant 0 : index
    %96 = vector.load %arg6[%c6, %c0_71, %c0_72, %c0_73] : memref<8x1x8x4xf32, #tpu.memory_space<vmem>>, vector<1x1x8x4xf32>
    %97 = vector.shape_cast %96 : vector<1x1x8x4xf32> to vector<1x8x4xf32>
    %98 = vector.shape_cast %95 : vector<1x8x4xf32> to vector<1x1x8x4xf32>
    tpu.vector_store %arg6[%c6, %c0_71, %c0_72, %c0_73], %98 {strides = array<i32>} : memref<8x1x8x4xf32, #tpu.memory_space<vmem>>, vector<1x1x8x4xf32>,
    %99 = vector.extract_strided_slice %3 {offsets = [0, 56], sizes = [8, 4], strides = [1, 1]} : vector<8x96xf32> to vector<8x4xf32>
    %100 = vector.shape_cast %99 : vector<8x4xf32> to vector<1x8x4xf32>
    %c6_74 = arith.constant 6 : index
    %c0_75 = arith.constant 0 : index
    %c0_76 = arith.constant 0 : index
    %c0_77 = arith.constant 0 : index
    %101 = vector.load %arg7[%c6_74, %c0_75, %c0_76, %c0_77] : memref<8x1x8x4xf32, #tpu.memory_space<vmem>>, vector<1x1x8x4xf32>
    %102 = vector.shape_cast %101 : vector<1x1x8x4xf32> to vector<1x8x4xf32>
    %103 = vector.shape_cast %100 : vector<1x8x4xf32> to vector<1x1x8x4xf32>
    tpu.vector_store %arg7[%c6_74, %c0_75, %c0_76, %c0_77], %103 {strides = array<i32>} : memref<8x1x8x4xf32, #tpu.memory_space<vmem>>, vector<1x1x8x4xf32>,
    %104 = vector.extract_strided_slice %3 {offsets = [0, 88], sizes = [8, 4], strides = [1, 1]} : vector<8x96xf32> to vector<8x4xf32>
    %105 = vector.shape_cast %104 : vector<8x4xf32> to vector<1x8x4xf32>
    %c6_78 = arith.constant 6 : index
    %c0_79 = arith.constant 0 : index
    %c0_80 = arith.constant 0 : index
    %c0_81 = arith.constant 0 : index
    %106 = vector.load %arg8[%c6_78, %c0_79, %c0_80, %c0_81] : memref<8x1x8x4xf32, #tpu.memory_space<vmem>>, vector<1x1x8x4xf32>
    %107 = vector.shape_cast %106 : vector<1x1x8x4xf32> to vector<1x8x4xf32>
    %108 = vector.shape_cast %105 : vector<1x8x4xf32> to vector<1x1x8x4xf32>
    tpu.vector_store %arg8[%c6_78, %c0_79, %c0_80, %c0_81], %108 {strides = array<i32>} : memref<8x1x8x4xf32, #tpu.memory_space<vmem>>, vector<1x1x8x4xf32>,
    %109 = vector.extract_strided_slice %3 {offsets = [0, 28], sizes = [8, 4], strides = [1, 1]} : vector<8x96xf32> to vector<8x4xf32>
    %110 = vector.shape_cast %109 : vector<8x4xf32> to vector<1x8x4xf32>
    %c7 = arith.constant 7 : index
    %c0_82 = arith.constant 0 : index
    %c0_83 = arith.constant 0 : index
    %c0_84 = arith.constant 0 : index
    %111 = vector.load %arg6[%c7, %c0_82, %c0_83, %c0_84] : memref<8x1x8x4xf32, #tpu.memory_space<vmem>>, vector<1x1x8x4xf32>
    %112 = vector.shape_cast %111 : vector<1x1x8x4xf32> to vector<1x8x4xf32>
    %113 = vector.shape_cast %110 : vector<1x8x4xf32> to vector<1x1x8x4xf32>
    tpu.vector_store %arg6[%c7, %c0_82, %c0_83, %c0_84], %113 {strides = array<i32>} : memref<8x1x8x4xf32, #tpu.memory_space<vmem>>, vector<1x1x8x4xf32>,
    %114 = vector.extract_strided_slice %3 {offsets = [0, 60], sizes = [8, 4], strides = [1, 1]} : vector<8x96xf32> to vector<8x4xf32>
    %115 = vector.shape_cast %114 : vector<8x4xf32> to vector<1x8x4xf32>
    %c7_85 = arith.constant 7 : index
    %c0_86 = arith.constant 0 : index
    %c0_87 = arith.constant 0 : index
    %c0_88 = arith.constant 0 : index
    %116 = vector.load %arg7[%c7_85, %c0_86, %c0_87, %c0_88] : memref<8x1x8x4xf32, #tpu.memory_space<vmem>>, vector<1x1x8x4xf32>
    %117 = vector.shape_cast %116 : vector<1x1x8x4xf32> to vector<1x8x4xf32>
    %118 = vector.shape_cast %115 : vector<1x8x4xf32> to vector<1x1x8x4xf32>
    tpu.vector_store %arg7[%c7_85, %c0_86, %c0_87, %c0_88], %118 {strides = array<i32>} : memref<8x1x8x4xf32, #tpu.memory_space<vmem>>, vector<1x1x8x4xf32>,
    %119 = vector.extract_strided_slice %3 {offsets = [0, 92], sizes = [8, 4], strides = [1, 1]} : vector<8x96xf32> to vector<8x4xf32>
    %120 = vector.shape_cast %119 : vector<8x4xf32> to vector<1x8x4xf32>
    %c7_89 = arith.constant 7 : index
    %c0_90 = arith.constant 0 : index
    %c0_91 = arith.constant 0 : index
    %c0_92 = arith.constant 0 : index
    %121 = vector.load %arg8[%c7_89, %c0_90, %c0_91, %c0_92] : memref<8x1x8x4xf32, #tpu.memory_space<vmem>>, vector<1x1x8x4xf32>
    %122 = vector.shape_cast %121 : vector<1x1x8x4xf32> to vector<1x8x4xf32>
    %123 = vector.shape_cast %120 : vector<1x8x4xf32> to vector<1x1x8x4xf32>
    tpu.vector_store %arg8[%c7_89, %c0_90, %c0_91, %c0_92], %123 {strides = array<i32>} : memref<8x1x8x4xf32, #tpu.memory_space<vmem>>, vector<1x1x8x4xf32>,
    %c0_93 = arith.constant 0 : index
    %c0_94 = arith.constant 0 : index
    %c0_95 = arith.constant 0 : index
    %c0_96 = arith.constant 0 : index
    %124 = vector.load %arg6[%c0_93, %c0_94, %c0_95, %c0_96] : memref<8x1x8x4xf32, #tpu.memory_space<vmem>>, vector<8x1x8x4xf32>
    %125 = vector.shape_cast %124 : vector<8x1x8x4xf32> to vector<8x8x4xf32>
    %c0_97 = arith.constant 0 : index
    %c0_98 = arith.constant 0 : index
    %c0_99 = arith.constant 0 : index
    %c0_100 = arith.constant 0 : index
    %126 = vector.load %arg7[%c0_97, %c0_98, %c0_99, %c0_100] : memref<8x1x8x4xf32, #tpu.memory_space<vmem>>, vector<8x1x8x4xf32>
    %127 = vector.shape_cast %126 : vector<8x1x8x4xf32> to vector<8x8x4xf32>
    %c0_101 = arith.constant 0 : index
    %c0_102 = arith.constant 0 : index
    %c0_103 = arith.constant 0 : index
    %c0_104 = arith.constant 0 : index
    %128 = vector.load %arg8[%c0_101, %c0_102, %c0_103, %c0_104] : memref<8x1x8x4xf32, #tpu.memory_space<vmem>>, vector<8x1x8x4xf32>
    %129 = vector.shape_cast %128 : vector<8x1x8x4xf32> to vector<8x8x4xf32>
    "tpu.trace_start"() <{level = 10 : i32, message = "bnd,bmd->bnm"}> : () -> ()
    %cst_105 = arith.constant dense<0.000000e+00> : vector<8x8x8xf32>
    %130 = tpu.matmul %125, %127, %cst_105 {dimension_numbers = #tpu.dot_dimension_numbers<[2], [2], [1], [1], [0, 0, 0, 1, 1, 1], [0], [0]>} : vector<8x8x4xf32>, vector<8x8x4xf32>, vector<8x8x8xf32> -> vector<8x8x8xf32>
    "tpu.trace_stop"() : () -> ()
    %cst_106 = arith.constant dense<0xFF800000> : vector<8x8xf32>
    %131 = vector.multi_reduction <maximumf>, %130, %cst_106 [2] : vector<8x8x8xf32> to vector<8x8xf32>
    %132 = vector.shape_cast %131 : vector<8x8xf32> to vector<8x8x1xf32>
    %133 = vector.broadcast %132 : vector<8x8x1xf32> to vector<8x8x8xf32>
    %134 = arith.subf %130, %133 : vector<8x8x8xf32>
    %135 = math.exp %134 : vector<8x8x8xf32>
    %cst_107 = arith.constant dense<0.000000e+00> : vector<8x8xf32>
    %136 = vector.multi_reduction <add>, %135, %cst_107 [2] : vector<8x8x8xf32> to vector<8x8xf32>
    %137 = vector.shape_cast %136 : vector<8x8xf32> to vector<8x8x1xf32>
    %138 = vector.broadcast %137 : vector<8x8x1xf32> to vector<8x8x8xf32>
    %139 = arith.divf %135, %138 : vector<8x8x8xf32>
    "tpu.trace_start"() <{level = 10 : i32, message = "bnm,bmd->bnd"}> : () -> ()
    %cst_108 = arith.constant dense<0.000000e+00> : vector<8x8x4xf32>
    %140 = tpu.matmul %139, %129, %cst_108 {dimension_numbers = #tpu.dot_dimension_numbers<[2], [1], [1], [2], [0, 0, 0, 1, 1, 2], [0], [0]>} : vector<8x8x8xf32>, vector<8x8x4xf32>, vector<8x8x4xf32> -> vector<8x8x4xf32>
    "tpu.trace_stop"() : () -> ()
    %141 = vector.shape_cast %140 : vector<8x8x4xf32> to vector<8x1x8x4xf32>
    %142 = vector.extract_strided_slice %141 {offsets = [0, 0, 0, 0], sizes = [1, 1, 8, 4], strides = [1, 1, 1, 1]} : vector<8x1x8x4xf32> to vector<1x1x8x4xf32>
    %143 = vector.shape_cast %142 : vector<1x1x8x4xf32> to vector<1x8x4xf32>
    %144 = vector.shape_cast %143 : vector<1x8x4xf32> to vector<8x4xf32>
    %c0_109 = arith.constant 0 : index
    %c0_110 = arith.constant 0 : index
    %145 = vector.load %arg9[%c0_109, %c0_110] : memref<8x32xf32, #tpu.memory_space<vmem>>, vector<8x4xf32>
    tpu.vector_store %arg9[%c0_109, %c0_110], %144 {strides = array<i32>} : memref<8x32xf32, #tpu.memory_space<vmem>>, vector<8x4xf32>,
    %146 = vector.extract_strided_slice %141 {offsets = [1, 0, 0, 0], sizes = [1, 1, 8, 4], strides = [1, 1, 1, 1]} : vector<8x1x8x4xf32> to vector<1x1x8x4xf32>
    %147 = vector.shape_cast %146 : vector<1x1x8x4xf32> to vector<1x8x4xf32>
    %148 = vector.shape_cast %147 : vector<1x8x4xf32> to vector<8x4xf32>
    %c0_111 = arith.constant 0 : index
    %c4_112 = arith.constant 4 : index
    %149 = vector.load %arg9[%c0_111, %c4_112] : memref<8x32xf32, #tpu.memory_space<vmem>>, vector<8x4xf32>
    tpu.vector_store %arg9[%c0_111, %c4_112], %148 {strides = array<i32>} : memref<8x32xf32, #tpu.memory_space<vmem>>, vector<8x4xf32>,
    %150 = vector.extract_strided_slice %141 {offsets = [2, 0, 0, 0], sizes = [1, 1, 8, 4], strides = [1, 1, 1, 1]} : vector<8x1x8x4xf32> to vector<1x1x8x4xf32>
    %151 = vector.shape_cast %150 : vector<1x1x8x4xf32> to vector<1x8x4xf32>
    %152 = vector.shape_cast %151 : vector<1x8x4xf32> to vector<8x4xf32>
    %c0_113 = arith.constant 0 : index
    %c8 = arith.constant 8 : index
    %153 = vector.load %arg9[%c0_113, %c8] : memref<8x32xf32, #tpu.memory_space<vmem>>, vector<8x4xf32>
    tpu.vector_store %arg9[%c0_113, %c8], %152 {strides = array<i32>} : memref<8x32xf32, #tpu.memory_space<vmem>>, vector<8x4xf32>,
    %154 = vector.extract_strided_slice %141 {offsets = [3, 0, 0, 0], sizes = [1, 1, 8, 4], strides = [1, 1, 1, 1]} : vector<8x1x8x4xf32> to vector<1x1x8x4xf32>
    %155 = vector.shape_cast %154 : vector<1x1x8x4xf32> to vector<1x8x4xf32>
    %156 = vector.shape_cast %155 : vector<1x8x4xf32> to vector<8x4xf32>
    %c0_114 = arith.constant 0 : index
    %c12 = arith.constant 12 : index
    %157 = vector.load %arg9[%c0_114, %c12] : memref<8x32xf32, #tpu.memory_space<vmem>>, vector<8x4xf32>
    tpu.vector_store %arg9[%c0_114, %c12], %156 {strides = array<i32>} : memref<8x32xf32, #tpu.memory_space<vmem>>, vector<8x4xf32>,
    %158 = vector.extract_strided_slice %141 {offsets = [4, 0, 0, 0], sizes = [1, 1, 8, 4], strides = [1, 1, 1, 1]} : vector<8x1x8x4xf32> to vector<1x1x8x4xf32>
    %159 = vector.shape_cast %158 : vector<1x1x8x4xf32> to vector<1x8x4xf32>
    %160 = vector.shape_cast %159 : vector<1x8x4xf32> to vector<8x4xf32>
    %c0_115 = arith.constant 0 : index
    %c16 = arith.constant 16 : index
    %161 = vector.load %arg9[%c0_115, %c16] : memref<8x32xf32, #tpu.memory_space<vmem>>, vector<8x4xf32>
    tpu.vector_store %arg9[%c0_115, %c16], %160 {strides = array<i32>} : memref<8x32xf32, #tpu.memory_space<vmem>>, vector<8x4xf32>,
    %162 = vector.extract_strided_slice %141 {offsets = [5, 0, 0, 0], sizes = [1, 1, 8, 4], strides = [1, 1, 1, 1]} : vector<8x1x8x4xf32> to vector<1x1x8x4xf32>
    %163 = vector.shape_cast %162 : vector<1x1x8x4xf32> to vector<1x8x4xf32>
    %164 = vector.shape_cast %163 : vector<1x8x4xf32> to vector<8x4xf32>
    %c0_116 = arith.constant 0 : index
    %c20 = arith.constant 20 : index
    %165 = vector.load %arg9[%c0_116, %c20] : memref<8x32xf32, #tpu.memory_space<vmem>>, vector<8x4xf32>
    tpu.vector_store %arg9[%c0_116, %c20], %164 {strides = array<i32>} : memref<8x32xf32, #tpu.memory_space<vmem>>, vector<8x4xf32>,
    %166 = vector.extract_strided_slice %141 {offsets = [6, 0, 0, 0], sizes = [1, 1, 8, 4], strides = [1, 1, 1, 1]} : vector<8x1x8x4xf32> to vector<1x1x8x4xf32>
    %167 = vector.shape_cast %166 : vector<1x1x8x4xf32> to vector<1x8x4xf32>
    %168 = vector.shape_cast %167 : vector<1x8x4xf32> to vector<8x4xf32>
    %c0_117 = arith.constant 0 : index
    %c24 = arith.constant 24 : index
    %169 = vector.load %arg9[%c0_117, %c24] : memref<8x32xf32, #tpu.memory_space<vmem>>, vector<8x4xf32>
    tpu.vector_store %arg9[%c0_117, %c24], %168 {strides = array<i32>} : memref<8x32xf32, #tpu.memory_space<vmem>>, vector<8x4xf32>,
    %170 = vector.extract_strided_slice %141 {offsets = [7, 0, 0, 0], sizes = [1, 1, 8, 4], strides = [1, 1, 1, 1]} : vector<8x1x8x4xf32> to vector<1x1x8x4xf32>
    %171 = vector.shape_cast %170 : vector<1x1x8x4xf32> to vector<1x8x4xf32>
    %172 = vector.shape_cast %171 : vector<1x8x4xf32> to vector<8x4xf32>
    %c0_118 = arith.constant 0 : index
    %c28 = arith.constant 28 : index
    %173 = vector.load %arg9[%c0_118, %c28] : memref<8x32xf32, #tpu.memory_space<vmem>>, vector<8x4xf32>
    tpu.vector_store %arg9[%c0_118, %c28], %172 {strides = array<i32>} : memref<8x32xf32, #tpu.memory_space<vmem>>, vector<8x4xf32>,
    %c0_119 = arith.constant 0 : index
    %c0_120 = arith.constant 0 : index
    %174 = vector.load %arg9[%c0_119, %c0_120] : memref<8x32xf32, #tpu.memory_space<vmem>>, vector<8x32xf32>
    %c0_121 = arith.constant 0 : index
    %c0_122 = arith.constant 0 : index
    %175 = vector.load %arg3[%c0_121, %c0_122] : memref<32x32xf32, #tpu.memory_space<vmem>>, vector<32x32xf32>
    %cst_123 = arith.constant dense<0.000000e+00> : vector<8x32xf32>
    %176 = tpu.matmul %174, %175, %cst_123 {dimension_numbers = #tpu.dot_dimension_numbers<[1], [0], [0], [1], [0, 0, 1, 1], [], []>} : vector<8x32xf32>, vector<32x32xf32>, vector<8x32xf32> -> vector<8x32xf32>
    %c0_124 = arith.constant 0 : index
    %c0_125 = arith.constant 0 : index
    %177 = vector.load %arg4[%c0_124, %c0_125] : memref<1x32xf32, #tpu.memory_space<vmem>>, vector<1x32xf32>
    %178 = vector.broadcast %177 : vector<1x32xf32> to vector<8x32xf32>
    %179 = arith.addf %176, %178 : vector<8x32xf32>
    %180 = vector.shape_cast %179 : vector<8x32xf32> to vector<1x8x32xf32>
    %c0_126 = arith.constant 0 : index
    %c0_127 = arith.constant 0 : index
    %c0_128 = arith.constant 0 : index
    %181 = vector.load %arg5[%c0_126, %c0_127, %c0_128] : memref<1x8x32xf32, #tpu.memory_space<vmem>>, vector<1x8x32xf32>
    tpu.vector_store %arg5[%c0_126, %c0_127, %c0_128], %180 {strides = array<i32>} : memref<1x8x32xf32, #tpu.memory_space<vmem>>, vector<1x8x32xf32>,
    return
  }
  func.func @transform_0(%arg0: i32) -> (i32, i32, i32) {
    %c0_i32 = arith.constant 0 : i32
    %c0_i32_0 = arith.constant 0 : i32
    %c0_i32_1 = arith.constant 0 : i32
    return %arg0, %c0_i32, %c0_i32_0 : i32, i32, i32
  }
  func.func @transform_1(%arg0: i32) -> (i32, i32) {
    %c0_i32 = arith.constant 0 : i32
    %c0_i32_0 = arith.constant 0 : i32
    %c0_i32_1 = arith.constant 0 : i32
    return %c0_i32, %c0_i32_0 : i32, i32
  }
  func.func @transform_2(%arg0: i32) -> (i32, i32) {
    %c0_i32 = arith.constant 0 : i32
    %c0_i32_0 = arith.constant 0 : i32
    %c0_i32_1 = arith.constant 0 : i32
    return %c0_i32, %c0_i32_0 : i32, i32
  }
  func.func @transform_3(%arg0: i32) -> (i32, i32) {
    %c0_i32 = arith.constant 0 : i32
    %c0_i32_0 = arith.constant 0 : i32
    %c0_i32_1 = arith.constant 0 : i32
    return %c0_i32, %c0_i32_0 : i32, i32
  }
  func.func @transform_4(%arg0: i32) -> (i32, i32, i32) {
    %c0_i32 = arith.constant 0 : i32
    %c0_i32_0 = arith.constant 0 : i32
    %c0_i32_1 = arith.constant 0 : i32
    return %arg0, %c0_i32, %c0_i32_0 : i32, i32, i32
  }
}

</mosaic_0001>

<bundles_post_ra>
// kernel: tpu_custom_call.1
= control target key start
LH: loop header
LB: loop body
LE: loop exit
PB: predicated region body
PF: predicated region fallthrough
CT: control target
= control target key end

     0   :  { %9 = vsyncpa [#allocation7], 0  ;;  %s1917_s0 = inlined_call_operand.hbm [shape: f32[2,8,32], index: 0, kind: input, shape index: {}]   ;;  %s1918_s1 = inlined_call_operand.hbm [shape: f32[32,96], index: 1, kind: input, shape index: {}]   ;;  %s1919_s2 = inlined_call_operand.hbm [shape: f32[32,32], index: 2, kind: input, shape index: {}]   ;;  %s1920_s3 = inlined_call_operand.vmem [shape: f32[1,32], index: 3, kind: input, shape index: {}]   ;;  %s1921_s4 = inlined_call_operand.hbm [shape: f32[2,8,32], index: 4, kind: output, shape index: {}]  }
   0x1   :  { %11 = vsyncpa [#allocation7 + $0x1], 0 }
   0x2   :  { %12 = vsyncpa [#allocation10], 0 }
   0x3   :  { %13 = vsyncpa [#allocation8], 0 }
   0x4   :  { %15 = vsyncpa [#allocation8 + $0x1], 0  ;;  %s1578_s15 = smov 0   ;;  %s1580_s16 = smov 0  }
   0x5   :  { %s1582_s17 = smov 0   ;;  %s1584_s18 = smov 0  }
   0x6 LB: > { %s152_s21 = sshll.u32 %s1918_s1, 4  ;;  %s1602_s22 = sadd.s32 4294967295, %s1517_s18   ;;  %s1517_s18 = sphi %s1584_s18, %s1936_s18   ;;  %s1513_s17 = sphi %s1582_s17, %s1935_s17   ;;  %s1509_s16 = sphi %s1580_s16, %s1934_s16   ;;  %s1505_s15 = sphi %s1578_s15, %s1933_s15   ;;  %s153_s21 = int_to_ptr.hbm [resolvable:$true] %s152_s21 }
   0x7   : > { %p1184_p0 = scmp.ge.s32.totalorder %s1517_s18, 1  ;;  %p42_p1 = scmp.eq.s32.totalorder %s1602_s22, 0 }
   0x8   : > { %p141_p2 = scmp.lt.s32.totalorder %s1517_s18, 3  ;;  %s1519_s24 = smov [#allocation9]  }
   0x9   : > { %s154_s25 = sshll.u32 %s1519_s24, 4  ;;  %s166_s28 = sshll.u32 %s1919_s2, 4  ;;  %s155_s25 = int_to_ptr.vmem [resolvable:$true] %s154_s25  ;;  %s167_s28 = int_to_ptr.hbm [resolvable:$true] %s166_s28 }
   0xa   : > { %p1607_p3 = pnand %p1184_p0, %p141_p2  ;;  %s1520_s29 = smov [#allocation11]  }
   0xb   : > { %s168_s30 = sshll.u32 %s1520_s29, 4  ;;  %s1521_s5 = smov 128   ;;  %s169_s30 = int_to_ptr.vmem [resolvable:$true] %s168_s30 }
   0xc   : > { %p1237_p4 = pneg %p1607_p3  ;;  %s1522_s6 = smov 8  }
   0xd   : > { %s1183_s7 = sadd.s32 4294967294, %s1517_s18   ;;  %s1621_s8 = sadd.s32 1, %s1517_s18  }
   0xe   : > { %p1238_p6 = pnand %p1237_p4, %p42_p1  ;;  %s25_s9 = ssub.s32 %s1517_s18, %s1621_s8 }
   0xf   : > { %s28_s10 = sadd.s32 1, %s1513_s17  ;;  %p26_p7 = scmp.eq.s32.totalorder %s25_s9, 0 }
  0x10   : > { %1240 = dma.hbm_to_vmem [thread:$0]  (!%p1238_p6), %s153_s21, 512, %s155_s25, [#allocation10], %s1521_s5, %s1521_s5, %s1522_s6  }
  0x11   : > { %1243 = dma.hbm_to_vmem [thread:$0]  (!%p1238_p6), %s167_s28, 512, %s169_s30, [#allocation10], %s1521_s5, %s1521_s5, %s1522_s6  }
  0x12   : > { %p35_p8 = scmp.ne.s32.totalorder %s1513_s17, %s1509_s16  ;;  %p36_p9 = scmp.eq.s32.totalorder %s1517_s18, 0 }
  0x13   : > { %p41_p10 = scmp.ne.s32.totalorder %s1509_s16, %s1505_s15  ;;  %p128_p13 = scmp.eq.s32.totalorder %s1602_s22, 1 }
  0x14   : > { %s1632_s11 = scalar_select %p26_p7, %s1513_s17, %s28_s10  }
  0x15   : > { %p1634_p11 = por %p36_p9, %p35_p8  ;;  %p1640_p12 = por %p42_p1, %p41_p10 }
  0x16   : > { %p134_p0 = scmp.eq.s32.totalorder %s1183_s7, 1  ;;  %p1254_p2 = scmp.lt.s32.totalorder %s1517_s18, 2 }
  0x17   : > { %s185_s14 = sand.u32 1, %s1513_s17   ;;  %p1647_p4 = por %p128_p13, %p35_p8 }
  0x18   : > { %p1651_p6 = por %p134_p0, %p41_p10  ;;  %s1188_s21 = sshll.u32 %s185_s14, 3 }
  0x19   : > { %s1189_s24 = sshll.u32 %s1517_s18, 3  ;;  %s189_s28 = scalar_lea.vmem [#allocation6], %s1188_s21 }
  0x1a   : > { %s193_s27 = scalar_lea.hbm %s1917_s0, %s1189_s24  ;;  %s197_s29 = sshll.u32 %s189_s28, 4  ;;  %s198_s29 = int_to_ptr.vmem [resolvable:$true] %s197_s29 }
  0x1b   : > { %s195_s30 = sshll.u32 %s193_s27, 4  ;;  %p1661_p7 = pnand %p1254_p2, %p1634_p11  ;;  %s196_s30 = int_to_ptr.hbm [resolvable:$true] %s195_s30 }
  0x1c   : > { %s186_s6 = scalar_lea.sflag [#allocation7], %s185_s14  ;;  %s1417_s7 = sshra.s32 %s196_s30, 4  ;;  %s1418_s7 = int_to_ptr.hbm [resolvable:$true] %s1417_s7 }
  0x1d   : > { %s1419_s9 = scalar_lea.hbm %s1418_s7, 8  ;;  %p1421_p9 = pneg %p1661_p7 }
  0x1e   : > { %p1420_p8 = scmp.ne.s32.totalorder %s1418_s7, %s1419_s9  ;;  %s1424_s24 = scalar_lea.hbm %s1917_s0, 16 }
  0x1f   : > { %p1425_p11 = scmp.lt.s32.totalorder %s1418_s7, %s1917_s0  ;;  %p1426_p0 = scmp.lt.s32.totalorder %s1424_s24, %s1419_s9 }
  0x20   : > { %p1422_p10 = pnand %p1421_p9, %p1420_p8 }
  0x21   : > { %p1427_p2 = por %p1426_p0, %p1425_p11 }
  0x22   : > { %p1423_p13 = pneg %p1422_p10 }
  0x24   : > { %p1428_p5 = pnand %p1427_p2, %p1423_p13 }
  0x26   : > { %1431 = shalt.err (!%p1428_p5)
}
  0x27   : > { %1247 = dma.hbm_to_vmem [thread:$0]  (!%p1661_p7), %s196_s30, 128, %s198_s29, %s186_s6  }
  0x28   : > { %206 = sbr.rel (%p1607_p3) target bundleno = 1159 (0x487), region = 36  ;;  %s1678_s14 = sand.u32 (!%p1607_p3), 1, %s1509_s16  }
  0x29   : > { %s1191_s26 = sshll.u32 (!%p1607_p3), %s1678_s14, 3  ;;  %s209_s27 = scalar_lea.sflag (!%p1607_p3), [#allocation7], %s1678_s14 }
  0x2a   : > { %s212_s28 = scalar_lea.vmem (!%p1607_p3), [#allocation6], %s1191_s26 }
  0x2d   : > { %1492 = dma.done.wait (%p1640_p12), %s209_s27, 128  }
  0x2e   : > { %1494 = vsyncadd (%p1640_p12), %s209_s27, 4294967168 }
  0x2f   : > { %1496 = dma.done.wait (%p42_p1), [#allocation10], 1024  }
  0x30   : > { %1498 = vsyncadd (%p42_p1), [#allocation10], 4294966272  ;;  %v252_v0 = vld [vmem:[#allocation9 + $0x18] sm:$0xff]  ;;  %v251_v1 = vld [vmem:[#allocation9 + $0x10] sm:$0xff]  ;;  %vm253_vm0 = vcmask 261120   ;;  %vm277_vm1 = vcmask 31744  }
  0x31   : > { %269 = vmatpush.msra.mxu0 %v252_v0  ;;  %v250_v2 = vld [vmem:[#allocation9 + $0x8] sm:$0xff]  ;;  %v249_v3 = vld [vmem:[#allocation9] sm:$0xff]  ;;  %v248_v4 = vld [vmem:[%s212_s28] sm:$0xff]  ;;  %s1523_s23 = smov 96   ;;  %s1524_s13 = smov 124   ;;  %vm625_vm2 = vcmask 64512  }
  0x32   : > { %s1525_s29 = smov 92   ;;  %s1526_s30 = smov 80  }
  0x33   : > { %270 = vmatpush.msra.mxu0 %v251_v1  ;;  %s1527_s5 = smov 120   ;;  %s1528_s6 = smov 88  }
  0x34   : > { %s1529_s7 = smov 108   ;;  %s1530_s9 = smov 112  }
  0x35   : > { %271 = vmatpush.msra.mxu0 %v250_v2  ;;  %s1531_s10 = smov 76   ;;  %s1532_s21 = smov 72  }
  0x36   : > { %s1533_s24 = smov 116   ;;  %s1534_s25 = smov 84  }
  0x37   : > { %272 = vmatpush.msra.mxu0 %v249_v3  ;;  %s1535_s12 = smov 100   ;;  %s1536_s27 = smov 104  }
  0x38   : > { %1195 = vmatmul.msk.f32.vlgmr.msra.gmra.mxu0 %vm253_vm0, %v248_v4  ;;  %s1537_s28 = smov 68  }
  0xb5   : > { %v1693_v5 = vpop.f32.mrf.mxu0 }
  0xb6   : > { %280 = vrot.lane.b32.xlu2 %v1693_v5, %s1523_s23  ;;  %288 = vrot.lane.b32.xlu1 %v1693_v5, %s1524_s13  ;;  %278 = vst.msk [vmem:[#allocation2] sm:$0xff] %vm277_vm1, %v1693_v5  ;;  %s1538_s23 = smov 64   ;;  %s1539_s13 = smov 60  }
  0xb7   : > { %293 = vrot.lane.b32.xlu0 %v1693_v5, %s1525_s29  ;;  %s1540_s29 = smov 52  }
  0xbd   : > { %v393_v9 = vld [vmem:[#allocation2] sm:$0xff] }
  0xbe   : > { %338 = vrot.lane.b32.xlu2 %v1693_v5, %s1526_s30  ;;  %303 = vrot.lane.b32.xlu1 %v1693_v5, %s1527_s5  ;;  %s1541_s30 = smov 40   ;;  %s1542_s5 = smov 48  }
  0xbf   : > { %308 = vrot.lane.b32.xlu0 %v1693_v5, %s1528_s6  ;;  %s1543_s6 = smov 56  }
  0xc6   : > { %348 = vrot.lane.b32.xlu2 %v1693_v5, %s1529_s7  ;;  %333 = vrot.lane.b32.xlu1 %v1693_v5, %s1530_s9  ;;  %s1544_s7 = smov 44   ;;  %s1545_s9 = smov 36  }
  0xc7   : > { %353 = vrot.lane.b32.xlu0 %v1693_v5, %s1531_s10  ;;  %s1546_s10 = smov 4  }
  0xce   : > { %368 = vrot.lane.b32.xlu2 %v1693_v5, %s1532_s21  ;;  %318 = vrot.lane.b32.xlu1 %v1693_v5, %s1533_s24  ;;  %s1547_s21 = smov 12   ;;  %s1548_s24 = smov 8  }
  0xcf   : > { %323 = vrot.lane.b32.xlu0 %v1693_v5, %s1534_s25  ;;  %s1549_s25 = smov 16  }
  0xd6   : > { %378 = vrot.lane.b32.xlu2 %v1693_v5, %s1535_s12  ;;  %363 = vrot.lane.b32.xlu1 %v1693_v5, %s1536_s27  ;;  %s1550_s12 = smov 24   ;;  %s1551_s27 = smov 20  }
  0xd7   : > { %383 = vrot.lane.b32.xlu0 %v1693_v5, %s1537_s28  ;;  %s1552_s28 = smov 28  }
  0xde   : > { %284 = vrot.lane.b32.xlu1 %v1693_v5, %s1538_s23  ;;  %s1222_s23 = sshll.u32 %s1602_s22, 3  ;;  %s1079_s22 = scalar_lea.sflag [#allocation8], %s1678_s14 }
 0x110   : > { %v281_v6 = vpop.permute.xlu2 %280 }
 0x111   : > { %283 = vst.msk [vmem:[#allocation3] sm:$0xff] %vm277_vm1, %v281_v6 }
 0x118   : > { %v339_v7 = vpop.permute.xlu2 %338  ;;  %v401_v8 = vld [vmem:[#allocation3] sm:$0xff] }
 0x119   : > { %342 = vst.msk [vmem:[#allocation3 + $0x20] sm:$0xff] %vm277_vm1, %v339_v7  ;;  %1196 = vmatpush.xpose.msk.msra.mxu1 %vm277_vm1, %v401_v8 }
 0x11c   : > { %1197 = vmatmul.msk.f32.vlgmr.msra.gmra.mxu1 %vm277_vm1, %v393_v9 }
 0x120   : > { %v349_v10 = vpop.permute.xlu2 %348  ;;  %v405_v19 = vld [vmem:[#allocation3 + $0x20] sm:$0xff] }
 0x121   : > { %352 = vst.msk [vmem:[#allocation2 + $0x28] sm:$0xff] %vm277_vm1, %v349_v10 }
 0x128   : > { %v369_v11 = vpop.permute.xlu2 %368  ;;  %v289_v12 = vpop.permute.xlu1 %288  ;;  %v398_v29 = vld [vmem:[#allocation2 + $0x28] sm:$0xff] }
 0x129   : > { %372 = vst.msk [vmem:[#allocation3 + $0x30] sm:$0xff] %vm277_vm1, %v369_v11  ;;  %v294_v13 = vpop.permute.xlu0 %293 }
 0x12a   : > { %292 = vst.msk [vmem:[#allocation2 + $0x8] sm:$0xff] %vm277_vm1, %v289_v12 }
 0x12b   : > { %297 = vst.msk [vmem:[#allocation3 + $0x8] sm:$0xff] %vm277_vm1, %v294_v13 }
 0x130   : > { %v379_v14 = vpop.permute.xlu2 %378  ;;  %v304_v15 = vpop.permute.xlu1 %303  ;;  %v407_v16 = vld [vmem:[#allocation3 + $0x30] sm:$0xff] }
 0x131   : > { %382 = vst.msk [vmem:[#allocation2 + $0x38] sm:$0xff] %vm277_vm1, %v379_v14  ;;  %v309_v17 = vpop.permute.xlu0 %308  ;;  %1208 = vmatpush.xpose.msk.msrb.mxu0 %vm277_vm1, %v407_v16  ;;  %v394_v20 = vld [vmem:[#allocation2 + $0x8] sm:$0xff] }
 0x132   : > { %307 = vst.msk [vmem:[#allocation2 + $0x10] sm:$0xff] %vm277_vm1, %v304_v15  ;;  %v402_v18 = vld [vmem:[#allocation3 + $0x8] sm:$0xff] }
 0x133   : > { %312 = vst.msk [vmem:[#allocation3 + $0x10] sm:$0xff] %vm277_vm1, %v309_v17  ;;  %1198 = vmatpush.xpose.msk.msra.mxu2 %vm277_vm1, %v402_v18 }
 0x136   : > { %1199 = vmatmul.msk.f32.vlgmr.msra.gmra.mxu2 %vm277_vm1, %v394_v20 }
 0x137   : > { %1204 = vmatpush.xpose.msk.msrb.mxu2 %vm277_vm1, %v405_v19 }
 0x138   : > { %v334_v21 = vpop.permute.xlu1 %333  ;;  %v400_v37 = vld [vmem:[#allocation2 + $0x38] sm:$0xff] }
 0x139   : > { %337 = vst.msk [vmem:[#allocation2 + $0x20] sm:$0xff] %vm277_vm1, %v334_v21  ;;  %v354_v22 = vpop.permute.xlu0 %353  ;;  %v395_v24 = vld [vmem:[#allocation2 + $0x10] sm:$0xff] }
 0x13a   : > { %357 = vst.msk [vmem:[#allocation3 + $0x28] sm:$0xff] %vm277_vm1, %v354_v22  ;;  %v403_v23 = vld [vmem:[#allocation3 + $0x10] sm:$0xff] }
 0x13b   : > { %1200 = vmatpush.xpose.msk.msra.mxu3 %vm277_vm1, %v403_v23 }
 0x13e   : > { %1201 = vmatmul.msk.f32.vlgmr.msra.gmra.mxu3 %vm277_vm1, %v395_v24 }
 0x140   : > { %v319_v25 = vpop.permute.xlu1 %318  ;;  %v397_v26 = vld [vmem:[#allocation2 + $0x20] sm:$0xff] }
 0x141   : > { %322 = vst.msk [vmem:[#allocation2 + $0x18] sm:$0xff] %vm277_vm1, %v319_v25  ;;  %v324_v27 = vpop.permute.xlu0 %323  ;;  %1205 = vmatmul.msk.f32.vlgmr.msrb.gmra.mxu2 %vm277_vm1, %v397_v26  ;;  %v406_v28 = vld [vmem:[#allocation3 + $0x28] sm:$0xff] }
 0x142   : > { %327 = vst.msk [vmem:[#allocation3 + $0x18] sm:$0xff] %vm277_vm1, %v324_v27  ;;  %1206 = vmatpush.xpose.msk.msrb.mxu3 %vm277_vm1, %v406_v28 }
 0x146   : > { %1207 = vmatmul.msk.f32.vlgmr.msrb.gmra.mxu3 %vm277_vm1, %v398_v29 }
 0x148   : > { %v364_v30 = vpop.permute.xlu1 %363  ;;  %v396_v33 = vld [vmem:[#allocation2 + $0x18] sm:$0xff] }
 0x149   : > { %367 = vst.msk [vmem:[#allocation2 + $0x30] sm:$0xff] %vm277_vm1, %v364_v30  ;;  %v384_v31 = vpop.permute.xlu0 %383  ;;  %v404_v32 = vld [vmem:[#allocation3 + $0x18] sm:$0xff] }
 0x14a   : > { %387 = vst.msk [vmem:[#allocation3 + $0x38] sm:$0xff] %vm277_vm1, %v384_v31  ;;  %1202 = vmatpush.xpose.msk.msrb.mxu1 %vm277_vm1, %v404_v32 }
 0x14d   : > { %1203 = vmatmul.msk.f32.vlgmr.msrb.gmra.mxu1 %vm277_vm1, %v396_v33 }
 0x150   : > { %v285_v34 = vpop.permute.xlu1 %284  ;;  %v399_v35 = vld [vmem:[#allocation2 + $0x30] sm:$0xff] }
 0x151   : > { %287 = vst.msk [vmem:[#allocation4] sm:$0xff] %vm277_vm1, %v285_v34  ;;  %1209 = vmatmul.msk.f32.vlgmr.msrb.gmra.mxu0 %vm277_vm1, %v399_v35  ;;  %v408_v36 = vld [vmem:[#allocation3 + $0x38] sm:$0xff] }
 0x152   : > { %1210 = vmatpush.xpose.msk.msra.mxu1 %vm277_vm1, %v408_v36 }
 0x155   : > { %1211 = vmatmul.msk.f32.vlgmr.msra.gmra.mxu1 %vm277_vm1, %v400_v37 }
 0x158   : > { %v409_v38 = vld [vmem:[#allocation4] sm:$0xff] }
 0x159   : > { %836 = vmatpush.msra.mxu2 %v409_v38 }
 0x199   : > { %v440_v39 = vpop.f32.mrf.mxu1 }
 0x19a   : > { %v626_v40 = vsel %vm625_vm2, %v440_v39, -inf }
 0x19b   : > { %627 = vmax.xlane.f32.xlu0 %v626_v40 }
 0x1b9   : > { %v466_v41 = vpop.f32.mrf.mxu2 }
 0x1ba   : > { %v629_v42 = vsel %vm625_vm2, %v466_v41, -inf }
 0x1bb   : > { %630 = vmax.xlane.f32.xlu1 %v629_v42 }
 0x1c1   : > { %v492_v43 = vpop.f32.mrf.mxu3 }
 0x1c2   : > { %v632_v52 = vsel %vm625_vm2, %v492_v43, -inf }
 0x1c4   : > { %v544_v53 = vpop.f32.mrf.mxu2 }
 0x1c5   : > { %v638_v54 = vsel %vm625_vm2, %v544_v53, -inf }
 0x1c9   : > { %v570_v44 = vpop.f32.mrf.mxu3 }
 0x1ca   : > { %v641_v45 = vsel %vm625_vm2, %v570_v44, -inf  ;;  %v518_v46 = vpop.f32.mrf.mxu1 }
 0x1cb   : > { %642 = vmax.xlane.f32.xlu1 %v641_v45  ;;  %v635_v47 = vsel %vm625_vm2, %v518_v46, -inf }
 0x1cc   : > { %636 = vmax.xlane.f32.xlu0 %v635_v47 }
 0x1ce   : > { %v596_v48 = vpop.f32.mrf.mxu0 }
 0x1cf   : > { %v644_v49 = vsel %vm625_vm2, %v596_v48, -inf }
 0x1d0   : > { %645 = vmax.xlane.f32.xlu2 %v644_v49 }
 0x1d2   : > { %v622_v50 = vpop.f32.mrf.mxu1 }
 0x1d3   : > { %v647_v51 = vsel %vm625_vm2, %v622_v50, -inf }
 0x1d4   : > { %648 = vmax.xlane.f32.xlu0 %v647_v51 }
 0x1d8   : > { %633 = vmax.xlane.f32.xlu2 %v632_v52 }
 0x1e0   : > { %639 = vmax.xlane.f32.xlu2 %v638_v54 }
 0x1f8   : > { %298 = vrot.lane.b32.xlu2 %v1693_v5, %s1539_s13 }
 0x20e   : > { %v628_v55 = vpop.xlane.xlu0 %627 }
 0x20f   : > { %v650_v56 = vsub.f32 %v440_v39, %v628_v55 }
 0x211   : > { %v658_v57 = vmul.f32 1.442695, %v650_v56 }
 0x213   : > { %1325 = vpow2.f32 %v658_v57 }
 0x219   : > { %v1754_v58 = vpop.eup %1325 }
 0x21a   : > { %v674_v59 = vsel %vm625_vm2, %v1754_v58, 0.0 }
 0x21b   : > { %675 = vadd.xlane.f32.xlu1 %v674_v59 }
 0x22e   : > { %v631_v60 = vpop.xlane.xlu1 %630 }
 0x22f   : > { %v651_v61 = vsub.f32 %v466_v41, %v631_v60 }
 0x231   : > { %v660_v62 = vmul.f32 1.442695, %v651_v61 }
 0x233   : > { %1327 = vpow2.f32 %v660_v62 }
 0x239   : > { %v1758_v63 = vpop.eup %1327 }
 0x23a   : > { %v677_v0 = vsel %vm625_vm2, %v1758_v63, 0.0 }
 0x23b   : > { %678 = vadd.xlane.f32.xlu2 %v677_v0 }
 0x23e   : > { %v643_v9 = vpop.xlane.xlu1 %642 }
 0x23f   : > { %v637_v1 = vpop.xlane.xlu0 %636  ;;  %v655_v14 = vsub.f32 %v570_v44, %v643_v9 }
 0x240   : > { %v653_v2 = vsub.f32 %v518_v46, %v637_v1 }
 0x241   : > { %v668_v17 = vmul.f32 1.442695, %v655_v14 }
 0x242   : > { %v664_v3 = vmul.f32 1.442695, %v653_v2 }
 0x243   : > { %v646_v4 = vpop.xlane.xlu2 %645 }
 0x244   : > { %1329 = vpow2.f32 %v664_v3  ;;  %v656_v6 = vsub.f32 %v596_v48, %v646_v4 }
 0x246   : > { %v670_v7 = vmul.f32 1.442695, %v656_v6 }
 0x247   : > { %v649_v18 = vpop.xlane.xlu0 %648 }
 0x248   : > { %1331 = vpow2.f32 %v670_v7  ;;  %v657_v22 = vsub.f32 %v622_v50, %v649_v18 }
 0x24a   : > { %v1762_v8 = vpop.eup %1329  ;;  %v672_v25 = vmul.f32 1.442695, %v657_v22 }
 0x24b   : > { %v634_v10 = vpop.xlane.xlu2 %633  ;;  %v683_v11 = vsel %vm625_vm2, %v1762_v8, 0.0 }
 0x24c   : > { %v652_v12 = vsub.f32 %v492_v43, %v634_v10  ;;  %684 = vadd.xlane.f32.xlu2 %v683_v11 }
 0x24e   : > { %v1766_v13 = vpop.eup %1331  ;;  %v662_v15 = vmul.f32 1.442695, %v652_v12 }
 0x24f   : > { %v692_v16 = vsel %vm625_vm2, %v1766_v13, 0.0 }
 0x250   : > { %1333 = vpow2.f32 %v662_v15  ;;  %693 = vadd.xlane.f32.xlu0 %v692_v16 }
 0x251   : > { %1335 = vpow2.f32 %v668_v17 }
 0x253   : > { %v640_v19 = vpop.xlane.xlu2 %639 }
 0x254   : > { %v654_v20 = vsub.f32 %v544_v53, %v640_v19 }
 0x256   : > { %v1770_v21 = vpop.eup %1333  ;;  %v666_v23 = vmul.f32 1.442695, %v654_v20 }
 0x257   : > { %v680_v24 = vsel %vm625_vm2, %v1770_v21, 0.0  ;;  %v1774_v27 = vpop.eup %1335 }
 0x258   : > { %1337 = vpow2.f32 %v666_v23  ;;  %681 = vadd.xlane.f32.xlu0 %v680_v24  ;;  %v689_v30 = vsel %vm625_vm2, %v1774_v27, 0.0 }
 0x259   : > { %1339 = vpow2.f32 %v672_v25 }
 0x25b   : > { %v299_v26 = vpop.permute.xlu2 %298 }
 0x25c   : > { %302 = vst.msk [vmem:[#allocation4 + $0x8] sm:$0xff] %vm277_vm1, %v299_v26 }
 0x25e   : > { %v1777_v28 = vpop.eup %1337 }
 0x25f   : > { %v686_v29 = vsel %vm625_vm2, %v1777_v28, 0.0  ;;  %v1783_v32 = vpop.eup %1339 }
 0x260   : > { %687 = vadd.xlane.f32.xlu1 %v686_v29  ;;  %690 = vadd.xlane.f32.xlu0 %v689_v30  ;;  %v695_v33 = vsel %vm625_vm2, %v1783_v32, 0.0 }
 0x263   : > { %v410_v31 = vld [vmem:[#allocation4 + $0x8] sm:$0xff] }
 0x264   : > { %328 = vrot.lane.b32.xlu2 %v1693_v5, %s1540_s29  ;;  %859 = vmatpush.msra.mxu3 %v410_v31 }
 0x268   : > { %696 = vadd.xlane.f32.xlu0 %v695_v33 }
 0x26c   : > { %373 = vrot.lane.b32.xlu2 %v1693_v5, %s1541_s30  ;;  %s1089_s30 = scalar_lea.hbm %s1921_s4, %s1222_s23 }
 0x279   : > { %343 = vrot.lane.b32.xlu1 %v1693_v5, %s1542_s5 }
 0x27c   : > { %313 = vrot.lane.b32.xlu0 %v1693_v5, %s1543_s6 }
 0x281   : > { %358 = vrot.lane.b32.xlu1 %v1693_v5, %s1544_s7  ;;  %s247_s7 = scalar_lea.vmem [#allocation12], %s1191_s26  ;;  %s1467_s26 = scalar_lea.hbm %s1921_s4, 16 }
 0x289   : > { %388 = vrot.lane.b32.xlu1 %v1693_v5, %s1545_s9  ;;  %s1091_s9 = sshll.u32 %s247_s7, 4  ;;  %s1092_s9 = int_to_ptr.vmem [resolvable:$true] %s1091_s9 }
 0x28e   : > { %v676_v34 = vpop.xlane.xlu1 %675 }
 0x28f   : > { %1341 = vrcp.f32 %v676_v34  ;;  %v709_v38 = vand.u32 2147483648, %v676_v34  ;;  %v707_v40 = vand.u32 2147483647, %v676_v34  ;;  %vm703_vm4 = vweird.f32 %v676_v34 }
 0x291   : > { %v710_v42 = vor.u32 1.1754944e-38, %v709_v38  ;;  %vm708_vm6 = vcmp.eq.f32.partialorder %v707_v40, 8.507059e+37 }
 0x295   : > { %v1342_v35 = vpop.eup %1341 }
 0x296   : > { %v699_v36 = vmul.f32 %v1342_v35, %v676_v34  ;;  %vm704_vm3 = vweird.f32 %v1342_v35 }
 0x297   : > { %vm705_vm5 = vmor %vm703_vm4, %vm704_vm3 }
 0x298   : > { %v700_v37 = vsub.f32 1.0, %v699_v36 }
 0x29a   : > { %v701_v39 = vmul.f32 %v1342_v35, %v700_v37 }
 0x29c   : > { %v702_v41 = vadd.f32 %v1342_v35, %v701_v39 }
 0x29e   : > { %v706_v43 = vsel %vm705_vm5, %v1342_v35, %v702_v41 }
 0x29f   : > { %v711_v44 = vsel %vm708_vm6, %v710_v42, %v706_v43 }
 0x2a0   : > { %v712_v45 = vmul.f32 %v1754_v58, %v711_v44 }
 0x2a2   : > { %1212 = vmatmul.msk.f32.vlgmr.msra.gmra.mxu2 %vm625_vm2, %v712_v45 }
 0x2ae   : > { %v679_v5 = vpop.xlane.xlu2 %678 }
 0x2af   : > { %1343 = vrcp.f32 %v679_v5  ;;  %v724_v49 = vand.u32 2147483648, %v679_v5  ;;  %v722_v51 = vand.u32 2147483647, %v679_v5  ;;  %vm718_vm8 = vweird.f32 %v679_v5 }
 0x2b1   : > { %v725_v53 = vor.u32 1.1754944e-38, %v724_v49  ;;  %vm723_vm10 = vcmp.eq.f32.partialorder %v722_v51, 8.507059e+37 }
 0x2b5   : > { %v1344_v46 = vpop.eup %1343 }
 0x2b6   : > { %v714_v47 = vmul.f32 %v1344_v46, %v679_v5  ;;  %vm719_vm7 = vweird.f32 %v1344_v46 }
 0x2b7   : > { %vm720_vm9 = vmor %vm718_vm8, %vm719_vm7 }
 0x2b8   : > { %v715_v48 = vsub.f32 1.0, %v714_v47 }
 0x2ba   : > { %v716_v50 = vmul.f32 %v1344_v46, %v715_v48 }
 0x2bc   : > { %v717_v52 = vadd.f32 %v1344_v46, %v716_v50 }
 0x2be   : > { %v721_v54 = vsel %vm720_vm9, %v1344_v46, %v717_v52 }
 0x2bf   : > { %v726_v55 = vsel %vm723_vm10, %v725_v53, %v721_v54  ;;  %v685_v56 = vpop.xlane.xlu2 %684 }
 0x2c0   : > { %1345 = vrcp.f32 %v685_v56  ;;  %v727_v57 = vmul.f32 %v1758_v63, %v726_v55  ;;  %v754_v0 = vand.u32 2147483648, %v685_v56  ;;  %v752_v2 = vand.u32 2147483647, %v685_v56 }
 0x2c1   : > { %vm748_vm12 = vweird.f32 %v685_v56 }
 0x2c2   : > { %1213 = vmatmul.msk.f32.vlgmr.msra.gmra.mxu3 %vm625_vm2, %v727_v57  ;;  %v755_v63 = vor.u32 1.1754944e-38, %v754_v0  ;;  %vm753_vm14 = vcmp.eq.f32.partialorder %v752_v2, 8.507059e+37 }
 0x2c3   : > { %v1797_v58 = vpop.xlane.xlu0 %693 }
 0x2c6   : > { %v1346_v59 = vpop.eup %1345 }
 0x2c7   : > { %v744_v60 = vmul.f32 %v1346_v59, %v685_v56  ;;  %v329_v61 = vpop.permute.xlu2 %328  ;;  %vm749_vm11 = vweird.f32 %v1346_v59 }
 0x2c8   : > { %332 = vst.msk [vmem:[#allocation4 + $0x18] sm:$0xff] %vm277_vm1, %v329_v61  ;;  %vm750_vm13 = vmor %vm748_vm12, %vm749_vm11  ;;  %v799_v61 = vand.u32 2147483648, %v1797_v58 }
 0x2c9   : > { %v745_v62 = vsub.f32 1.0, %v744_v60 }
 0x2cb   : > { %v746_v1 = vmul.f32 %v1346_v59, %v745_v62  ;;  %v1800_v4 = vpop.xlane.xlu0 %681 }
 0x2cc   : > { %v739_v40 = vand.u32 2147483648, %v1800_v4  ;;  %vm733_vm6 = vweird.f32 %v1800_v4  ;;  %v737_v44 = vand.u32 2147483647, %v1800_v4 }
 0x2cd   : > { %v747_v3 = vadd.f32 %v1346_v59, %v746_v1 }
 0x2ce   : > { %v740_v49 = vor.u32 1.1754944e-38, %v739_v40  ;;  %vm738_vm10 = vcmp.eq.f32.partialorder %v737_v44, 8.507059e+37 }
 0x2cf   : > { %v751_v6 = vsel %vm750_vm13, %v1346_v59, %v747_v3  ;;  %v374_v7 = vpop.permute.xlu2 %373  ;;  %v412_v9 = vld [vmem:[#allocation4 + $0x18] sm:$0xff] }
 0x2d0   : > { %v756_v10 = vsel %vm753_vm14, %v755_v63, %v751_v6  ;;  %377 = vst.msk [vmem:[#allocation4 + $0x30] sm:$0xff] %vm277_vm1, %v374_v7  ;;  %905 = vmatpush.msrb.mxu1 %v412_v9  ;;  %vm793_vm14 = vweird.f32 %v1797_v58  ;;  %v800_v7 = vor.u32 1.1754944e-38, %v799_v61 }
 0x2d1   : > { %v757_v11 = vmul.f32 %v1762_v8, %v756_v10 }
 0x2d3   : > { %1215 = vmatmul.msk.f32.vlgmr.msrb.gmra.mxu1 %vm625_vm2, %v757_v11  ;;  %v688_v12 = vpop.xlane.xlu1 %687  ;;  %v1806_v14 = vpop.xlane.xlu0 %690 }
 0x2d4   : > { %1347 = vrcp.f32 %v688_v12  ;;  %v769_v34 = vand.u32 2147483648, %v688_v12  ;;  %vm763_vm3 = vweird.f32 %v688_v12  ;;  %v767_v35 = vand.u32 2147483647, %v688_v12 }
 0x2d5   : > { %1349 = vrcp.f32 %v1800_v4  ;;  %v784_v52 = vand.u32 2147483648, %v1806_v14  ;;  %vm778_vm11 = vweird.f32 %v1806_v14  ;;  %v782_v54 = vand.u32 2147483647, %v1806_v14 }
 0x2d6   : > { %1351 = vrcp.f32 %v1806_v14  ;;  %v770_v45 = vor.u32 1.1754944e-38, %v769_v34  ;;  %vm768_vm8 = vcmp.eq.f32.partialorder %v767_v35, 8.507059e+37  ;;  %v1047_v34 = vld [vmem:[#allocation11 + $0x8] sm:$0xff]  ;;  %v1046_v35 = vld [vmem:[#allocation11] sm:$0xff] }
 0x2d7   : > { %1353 = vrcp.f32 %v1797_v58  ;;  %v785_v1 = vor.u32 1.1754944e-38, %v784_v52  ;;  %v415_v6 = vld [vmem:[#allocation4 + $0x30] sm:$0xff] }
 0x2da   : > { %v1348_v15 = vpop.eup %1347 }
 0x2db   : > { %v1350_v16 = vpop.eup %1349  ;;  %v759_v17 = vmul.f32 %v1348_v15, %v688_v12  ;;  %v1811_v20 = vpop.xlane.xlu0 %696  ;;  %vm764_vm15 = vweird.f32 %v1348_v15 }
 0x2dc   : > { %v729_v18 = vmul.f32 %v1350_v16, %v1800_v4  ;;  %v1813_v8 = vpop.eup %1351  ;;  %1355 = vrcp.f32 %v1811_v20  ;;  %vm734_vm4 = vweird.f32 %v1350_v16  ;;  %vm1824_vm5 = vmor %vm763_vm3, %vm764_vm15  ;;  %vm783_vm3 = vcmp.eq.f32.partialorder %v782_v54, 8.507059e+37 }
 0x2dd   : > { %v760_v19 = vsub.f32 1.0, %v759_v17  ;;  %v1816_v23 = vpop.eup %1353  ;;  %v774_v25 = vmul.f32 %v1813_v8, %v1806_v14  ;;  %vm735_vm7 = vmor %vm733_vm6, %vm734_vm4  ;;  %vm779_vm9 = vweird.f32 %v1813_v8  ;;  %vm808_vm6 = vweird.f32 %v1811_v20 }
 0x2de   : > { %v730_v22 = vsub.f32 1.0, %v729_v18  ;;  %v789_v26 = vmul.f32 %v1816_v23, %v1797_v58  ;;  %vm794_vm12 = vweird.f32 %v1816_v23  ;;  %vm1847_vm13 = vmor %vm778_vm11, %vm779_vm9  ;;  %vm1019_vm9 = vcmask 130144  }
 0x2df   : > { %v761_v24 = vmul.f32 %v1348_v15, %v760_v19  ;;  %v775_v31 = vsub.f32 1.0, %v774_v25  ;;  %vm795_vm15 = vmor %vm793_vm14, %vm794_vm12  ;;  %vm1031_vm11 = vcmask 195744   ;;  %vm1037_vm12 = vcmask 228544  }
 0x2e0   : > { %v731_v29 = vmul.f32 %v1350_v16, %v730_v22  ;;  %v790_v37 = vsub.f32 1.0, %v789_v26 }
 0x2e1   : > { %v762_v30 = vadd.f32 %v1348_v15, %v761_v24  ;;  %v776_v42 = vmul.f32 %v1813_v8, %v775_v31  ;;  %v1049_v31 = vld [vmem:[#allocation11 + $0x18] sm:$0xff] }
 0x2e2   : > { %v1822_v33 = vpop.eup %1355  ;;  %v732_v38 = vadd.f32 %v1350_v16, %v731_v29  ;;  %v791_v46 = vmul.f32 %v1816_v23, %v790_v37 }
 0x2e3   : > { %v766_v41 = vsel %vm1824_vm5, %v1348_v15, %v762_v30  ;;  %v804_v43 = vmul.f32 %v1822_v33, %v1811_v20  ;;  %v777_v50 = vadd.f32 %v1813_v8, %v776_v42  ;;  %vm809_vm4 = vweird.f32 %v1822_v33 }
 0x2e4   : > { %v736_v47 = vsel %vm735_vm7, %v1350_v16, %v732_v38  ;;  %v771_v48 = vsel %vm768_vm8, %v770_v45, %v766_v41  ;;  %v792_v59 = vadd.f32 %v1816_v23, %v791_v46  ;;  %vm810_vm7 = vmor %vm808_vm6, %vm809_vm4  ;;  %v1324_v41 = vld [vmem:[%s1920_s3] ss:$0 sm:$0xff] }
 0x2e5   : > { %v805_v51 = vsub.f32 1.0, %v804_v43  ;;  %v741_v53 = vsel %vm738_vm10, %v740_v49, %v736_v47  ;;  %v772_v57 = vmul.f32 %v1777_v28, %v771_v48  ;;  %v781_v62 = vsel %vm1847_vm13, %v1813_v8, %v777_v50 }
 0x2e6   : > { %v797_v28 = vand.u32 2147483647, %v1797_v58  ;;  %v742_v3 = vmul.f32 %v1770_v21, %v741_v53  ;;  %v796_v4 = vsel %vm795_vm15, %v1816_v23, %v792_v59  ;;  %v786_v63 = vsel %vm783_vm3, %v785_v1, %v781_v62 }
 0x2e7   : > { %v806_v0 = vmul.f32 %v1822_v33, %v805_v51  ;;  %v814_v58 = vand.u32 2147483648, %v1811_v20  ;;  %v812_v21 = vand.u32 2147483647, %v1811_v20  ;;  %v787_v14 = vmul.f32 %v1774_v27, %v786_v63 }
 0x2e8   : > { %vm798_vm5 = vcmp.eq.f32.partialorder %v797_v28, 8.507059e+37  ;;  %vm1025_vm10 = vcmask 162944   ;;  %vm1043_vm13 = vcmask 261344  }
 0x2e9   : > { %v807_v9 = vadd.f32 %v1822_v33, %v806_v0  ;;  %v801_v10 = vsel %vm798_vm5, %v800_v7, %v796_v4  ;;  %v815_v16 = vor.u32 1.1754944e-38, %v814_v58  ;;  %vm813_vm8 = vcmp.eq.f32.partialorder %v812_v21, 8.507059e+37 }
 0x2ea   : > { %v802_v17 = vmul.f32 %v1766_v13, %v801_v10 }
 0x2eb   : > { %v344_v36 = vpop.permute.xlu1 %343  ;;  %v811_v15 = vsel %vm810_vm7, %v1822_v33, %v807_v9  ;;  %v1048_v33 = vld [vmem:[#allocation11 + $0x10] sm:$0xff] }
 0x2ec   : > { %347 = vst.msk [vmem:[#allocation4 + $0x20] sm:$0xff] %vm277_vm1, %v344_v36  ;;  %v816_v18 = vsel %vm813_vm8, %v815_v16, %v811_v15 }
 0x2ed   : > { %v817_v20 = vmul.f32 %v1783_v32, %v816_v18 }
 0x2ee   : > { %v314_v5 = vpop.permute.xlu0 %313 }
 0x2ef   : > { %317 = vst.msk [vmem:[#allocation4 + $0x10] sm:$0xff] %vm277_vm1, %v314_v5 }
 0x2f3   : > { %v359_v55 = vpop.permute.xlu1 %358  ;;  %v413_v56 = vld [vmem:[#allocation4 + $0x20] sm:$0xff] }
 0x2f4   : > { %362 = vst.msk [vmem:[#allocation4 + $0x28] sm:$0xff] %vm277_vm1, %v359_v55  ;;  %928 = vmatpush.msrb.mxu2 %v413_v56 }
 0x2f5   : > { %1216 = vmatmul.msk.f32.vlgmr.msrb.gmra.mxu2 %vm625_vm2, %v772_v57 }
 0x2f6   : > { %v411_v2 = vld [vmem:[#allocation4 + $0x10] sm:$0xff]  ;;  %1069 = vmatpush.msra.mxu2 %v1049_v31 }
 0x2f7   : > { %882 = vmatpush.msra.mxu0 %v411_v2 }
 0x2f8   : > { %1214 = vmatmul.msk.f32.vlgmr.msra.gmra.mxu0 %vm625_vm2, %v742_v3  ;;  %1070 = vmatpush.msra.mxu2 %v1048_v33 }
 0x2f9   : > { %974 = vmatpush.msrb.mxu0 %v415_v6 }
 0x2fa   : > { %1071 = vmatpush.msra.mxu2 %v1047_v34 }
 0x2fb   : > { %v389_v11 = vpop.permute.xlu1 %388  ;;  %v414_v12 = vld [vmem:[#allocation4 + $0x28] sm:$0xff] }
 0x2fc   : > { %392 = vst.msk [vmem:[#allocation4 + $0x38] sm:$0xff] %vm277_vm1, %v389_v11  ;;  %951 = vmatpush.msrb.mxu3 %v414_v12  ;;  %1072 = vmatpush.msra.mxu2 %v1046_v35 }
 0x2fd   : > { %1217 = vmatmul.msk.f32.vlgmr.msrb.gmra.mxu3 %vm625_vm2, %v787_v14 }
 0x300   : > { %1218 = vmatmul.msk.f32.vlgmr.msrb.gmra.mxu0 %vm625_vm2, %v802_v17 }
 0x303   : > { %v416_v19 = vld [vmem:[#allocation4 + $0x38] sm:$0xff] }
 0x304   : > { %997 = vmatpush.msra.mxu1 %v416_v19 }
 0x305   : > { %1219 = vmatmul.msk.f32.vlgmr.msra.gmra.mxu1 %vm625_vm2, %v817_v20  ;;  %vm1013_vm2 = vcmask 97344  }
 0x325   : > { %v838_v27 = vpop.f32.mrf.mxu2 }
 0x326   : > { %1002 = vst.msk [vmem:[#allocation5] sm:$0xff] %vm277_vm1, %v838_v27  ;;  %vm1007_vm1 = vcmask 64544  }
 0x345   : > { %v861_v8 = vpop.f32.mrf.mxu3 }
 0x346   : > { %1004 = vrot.lane.b32.xlu0 %v861_v8, %s1546_s10  ;;  %s1093_s10 = sshll.u32 %s1089_s30, 4  ;;  %s1094_s10 = int_to_ptr.hbm [resolvable:$true] %s1093_s10 }
 0x350   : > { %v907_v22 = vpop.f32.mrf.mxu1 }
 0x351   : > { %1016 = vrot.lane.b32.xlu1 %v907_v22, %s1547_s21  ;;  %s1461_s21 = sshra.s32 %s1094_s10, 4  ;;  %s1462_s21 = int_to_ptr.hbm [resolvable:$true] %s1461_s21 }
 0x352   : > { %p1468_p12 = scmp.lt.s32.totalorder %s1462_s21, %s1921_s4 }
 0x375   : > { %v884_v13 = vpop.f32.mrf.mxu0 }
 0x376   : > { %1010 = vrot.lane.b32.xlu2 %v884_v13, %s1548_s24  ;;  %s1463_s24 = scalar_lea.hbm %s1462_s21, 8 }
 0x377   : > { %p1464_p1 = scmp.ne.s32.totalorder %s1462_s21, %s1463_s24  ;;  %p1469_p7 = scmp.lt.s32.totalorder %s1467_s26, %s1463_s24 }
 0x378   : > { %v930_v23 = vpop.f32.mrf.mxu2 }
 0x379   : > { %1022 = vrot.lane.b32.xlu0 %v930_v23, %s1549_s25  ;;  %p1465_p3 = pnand %p1464_p1, %p1647_p4  ;;  %p1470_p8 = por %p1469_p7, %p1468_p12 }
 0x37b   : > { %p1466_p5 = pneg %p1465_p3 }
 0x37d   : > { %v976_v24 = vpop.f32.mrf.mxu0  ;;  %p1471_p9 = pnand %p1470_p8, %p1466_p5 }
 0x37e   : > { %1034 = vrot.lane.b32.xlu1 %v976_v24, %s1550_s12 }
 0x380   : > { %v953_v32 = vpop.f32.mrf.mxu3 }
 0x381   : > { %1028 = vrot.lane.b32.xlu2 %v953_v32, %s1551_s27 }
 0x382   : > { %v999_v25 = vpop.f32.mrf.mxu1 }
 0x383   : > { %1040 = vrot.lane.b32.xlu0 %v999_v25, %s1552_s28 }
 0x3b8   : > { %v1005_v26 = vpop.permute.xlu0 %1004 }
 0x3b9   : > { %1008 = vst.msk [vmem:[#allocation5] sm:$0xff] %vm1007_vm1, %v1005_v26 }
 0x3c3   : > { %v1017_v30 = vpop.permute.xlu1 %1016 }
 0x3d0   : > { %v1011_v29 = vpop.permute.xlu2 %1010 }
 0x3d1   : > { %1014 = vst.msk [vmem:[#allocation5] sm:$0xff] %vm1013_vm2, %v1011_v29 }
 0x3d2   : > { %1020 = vst.msk [vmem:[#allocation5] sm:$0xff] %vm1019_vm9, %v1017_v30 }
 0x3db   : > { %v1029_v37 = vpop.permute.xlu2 %1028 }
 0x3eb   : > { %v1023_v36 = vpop.permute.xlu0 %1022 }
 0x3ec   : > { %1026 = vst.msk [vmem:[#allocation5] sm:$0xff] %vm1025_vm10, %v1023_v36 }
 0x3ed   : > { %1032 = vst.msk [vmem:[#allocation5] sm:$0xff] %vm1031_vm11, %v1029_v37 }
 0x3f0   : > { %v1035_v38 = vpop.permute.xlu1 %1034 }
 0x3f1   : > { %1038 = vst.msk [vmem:[#allocation5] sm:$0xff] %vm1037_vm12, %v1035_v38 }
 0x3f5   : > { %v1041_v39 = vpop.permute.xlu0 %1040 }
 0x3f6   : > { %1044 = vst.msk [vmem:[#allocation5] sm:$0xff] %vm1043_vm13, %v1041_v39 }
 0x3fd   : > { %v1045_v40 = vld [vmem:[#allocation5] sm:$0xff] }
 0x3fe   : > { %1220 = vmatmul.msk.f32.vlgmr.msra.gmra.mxu2 %vm253_vm0, %v1045_v40 }
 0x481   : > { %v1074_v42 = vpop.f32.mrf.mxu2 }
 0x482   : > { %v1075_v43 = vadd.f32 %v1324_v41, %v1074_v42 }
 0x484   : > { %1077 = vst.msk [vmem:[%s247_s7] sm:$0xff] %vm253_vm0, %v1075_v43 }
 0x485   : > { %1474 = shalt.err (!%p1471_p9)
}
 0x486   : > { %1235 = dma.vmem_to_hbm [thread:$0]  (%p1647_p4), %s1092_s9, 128, %s1094_s10, %s1079_s22  }
 0x487 PF: > { %s1105_s14 = sand.u32 1, %s1505_s15   ;;  %p1932_p10 = scmp.ge.s32.totalorder %s1517_s18, 2 }
 0x488   : > { %s1106_s23 = scalar_lea.sflag [#allocation8], %s1105_s14 }
 0x489   : > { %p1249_p13 = pnand %p1932_p10, %p1651_p6 }
 0x48b   : > { %p1250_p11 = pneg %p1249_p13 }
 0x48d   : > { %1500 = dma.done.wait (%p1250_p11), %s1106_s23, 128  }
 0x48e   : > { %1502 = vsyncadd (%p1250_p11), %s1106_s23, 4294967168  ;;  %p18_p0 = scmp.ge.s32.totalorder %s1621_s8, 4   ;;  %s1933_s15 = smov %s1509_s16 }
 0x48f   : > { %s1934_s16 = smov %s1513_s17  ;;  %s1935_s17 = smov %s1632_s11 }
 0x490   : > { %s1936_s18 = smov %s1621_s8  ;;  %20 = sbr.rel (!%p18_p0) target bundleno = 6 (0x6), region = 110 }
 0x495   :  { %1112 = vsyncpa [#allocation7], 1 }
 0x496   :  { %1114 = vsyncpa [#allocation7 + $0x1], 1 }
 0x497   :  { %1115 = vsyncpa [#allocation10], 1 }
 0x498   :  { %1116 = vsyncpa [#allocation8], 1 }
 0x499   :  { %1118 = vsyncpa [#allocation8 + $0x1], 1 }

</bundles_post_ra>
